<compile_context>
chip_gen: v7x
topology: tpu7x:2x2x1
jax: 0.10.0
libtpu: 0.0.40
codegen_flags: <defaults>
</compile_context>

<pallas_src>
import jax
import jax.numpy as jnp
from jax.experimental import pallas as pl
from jax.experimental.pallas import tpu as pltpu


def _make_kernel(n_valid, n_pad, tk):
    masked = (n_pad != n_valid)

    def kernel(x_q_ref, k_ref, v_ref, wq_ref, bq_ref, gamma_ref, o_ref,
               q_scr, m_scr, l_scr, acc_scr):
        ki = pl.program_id(2)
        nk = pl.num_programs(2)

        @pl.when(ki == 0)
        def _init():
            # Query projection for this (batch, q-tile): computed once, cached bf16.
            xq = x_q_ref[0].astype(jnp.bfloat16)                            # (C, tq)
            q = jnp.dot(wq_ref[...], xq,
                        preferred_element_type=jnp.float32) + bq_ref[...]   # (cqp, tq) f32
            q_scr[...] = q.astype(jnp.bfloat16)
            m_scr[...] = jnp.full(m_scr.shape, -1e30, m_scr.dtype)
            l_scr[...] = jnp.zeros(l_scr.shape, l_scr.dtype)
            acc_scr[...] = jnp.zeros(acc_scr.shape, acc_scr.dtype)

        k = k_ref[0]                                                        # (cqp, tk) bf16
        v = v_ref[0]                                                        # (C,   tk) bf16

        # Transposed scores: s[j, i] = sum_c k[c, j] * q[c, i] -> (tk, tq).
        # Only the small (cqp, tk) LHS needs layout work; no NxN transpose.
        s = jax.lax.dot_general(k, q_scr[...], (((0,), (0,)), ((), ())),
                                preferred_element_type=jnp.float32)

        if masked:
            # Mask zero-padded key positions (only the last key tile has any).
            kpos = ki * tk + jax.lax.broadcasted_iota(jnp.int32, (tk, 1), 0)
            s = jnp.where(kpos < n_valid, s, -1e30)

        # Online softmax over the key axis (axis 0); statistics stay f32.
        m_prev = m_scr[...]                                                 # (1, tq)
        m_new = jnp.maximum(m_prev, jnp.max(s, axis=0, keepdims=True))
        alpha = jnp.exp(m_prev - m_new)                                     # (1, tq)
        # exp emitted straight to bf16; l and the numerator use the SAME p.
        p = jnp.exp(s - m_new).astype(jnp.bfloat16)                         # (tk, tq)
        l_scr[...] = alpha * l_scr[...] + jnp.sum(
            p, axis=0, keepdims=True, dtype=jnp.float32)
        acc_scr[...] = alpha * acc_scr[...] + jnp.dot(
            v, p, preferred_element_type=jnp.float32)                       # (C, tq)
        m_scr[...] = m_new

        @pl.when(ki == nk - 1)
        def _finalize():
            # gamma and the softmax 1/l folded into ONE per-query scale (EUP
            # recip); residual add stays f32-exact.
            scale = gamma_ref[0] * pl.reciprocal(l_scr[...], approx=True)   # (1, tq)
            o_ref[0] = acc_scr[...] * scale + x_q_ref[0]

    return kernel


def _device_kind():
    try:
        return jax.devices()[0].device_kind.lower()
    except Exception:
        return ""


def _pick_tile(n_pad, cap):
    """Largest lane-aligned tile <= cap that divides n_pad (n_pad % 128 == 0)."""
    for t in (512, 256, 128):
        if t <= cap and n_pad % t == 0:
            return t
    return min(n_pad, 128)


def self_attention(x, wq, bq, wk, bk, wv, bv, gamma, *, tq=None, tk=None):
    """x: (B, C, H, W) f32.  wq/wk: (C//8, C), wv: (C, C), biases 1-D, gamma (1,)."""
    B, C, H, W = x.shape
    N = H * W
    Cq = wq.shape[0]
    cqp = max(16, ((Cq + 15) // 16) * 16)   # pad q/k channels to a 16-row bf16 vreg

    # ---- pad spatial size to a multiple of 128 (lane-aligned tiles) ----
    N_pad = max(128, ((N + 127) // 128) * 128)
    x_flat = x.reshape(B, C, N).astype(jnp.float32)
    if N_pad != N:
        x_pad = jnp.zeros((B, C, N_pad), jnp.float32).at[:, :, :N].set(x_flat)
    else:
        x_pad = x_flat

    # ---- generation-aware tile defaults ----
    kind = _device_kind()
    is_v5e = ("v5 lite" in kind) or ("v5e" in kind) or ("v5litepod" in kind)
    tq = tq or _pick_tile(N_pad, 512)
    tk = tk or _pick_tile(N_pad, 256 if is_v5e else 512)
    assert N_pad % tq == 0 and N_pad % tk == 0, "tiles must divide padded N"
    nq, nk = N_pad // tq, N_pad // tk

    # ---- projections (K/V computed ONCE here, not per query tile) ----
    def pad_rows(w, b):
        wp = jnp.zeros((cqp, C), jnp.float32).at[:Cq].set(w)
        bp = jnp.zeros((cqp,), jnp.float32).at[:Cq].set(b)
        return wp, bp                      # zero pad rows -> exactly zero scores

    wq_p, bq_p = pad_rows(wq, bq)
    wk_p, bk_p = pad_rows(wk, bk)

    k_proj = (jnp.einsum('oc,bcn->bon', wk_p, x_pad)
              + bk_p[None, :, None]).astype(jnp.bfloat16)          # (B, cqp, N_pad)
    v_proj = (jnp.einsum('oc,bcn->bon', wv.astype(jnp.float32), x_pad)
              + jnp.asarray(bv, jnp.float32)[None, :, None]
              ).astype(jnp.bfloat16)                               # (B, C, N_pad)

    wq_b = wq_p.astype(jnp.bfloat16)
    bq_2d = bq_p.reshape(cqp, 1)
    gamma = jnp.asarray(gamma, jnp.float32).reshape(1)

    # ---- scoped-VMEM budget (blocks are double-buffered), generation-aware cap ----
    f32, bf16 = 4, 2
    est = (2 * C * tq * f32                      # x query block
           + 2 * C * tq * f32                    # output block
           + 2 * cqp * tk * bf16                 # k block
           + 2 * C * tk * bf16                   # v block
           + 2 * (cqp * C * bf16 + cqp * f32)    # Wq + bq
           + cqp * tq * bf16 + 2 * 8 * tq * f32 + C * tq * f32   # scratch q/m/l/acc
           + 3 * tk * tq * f32)                  # s / p temporaries
    try:
        phys = pltpu.get_tpu_info().vmem_capacity_bytes
    except Exception:
        phys = 128 * 2 ** 20
    cap = min(48 * 2 ** 20, int(0.6 * phys))     # ~38 MiB on v7x, 48 MiB on v5e/v6e
    vmem_limit = int(min(cap, max(16 * 2 ** 20, 4 * est)))

    kernel = _make_kernel(N, N_pad, tk)

    out_flat = pl.pallas_call(
        kernel,
        out_shape=jax.ShapeDtypeStruct((B, C, N_pad), jnp.float32),
        grid_spec=pltpu.PrefetchScalarGridSpec(
            num_scalar_prefetch=0,
            grid=(B, nq, nk),
            in_specs=[
                pl.BlockSpec((1, C, tq), lambda b, qi, ki: (b, 0, qi)),    # x (residual + q proj)
                pl.BlockSpec((1, cqp, tk), lambda b, qi, ki: (b, 0, ki)),  # k_proj (bf16)
                pl.BlockSpec((1, C, tk), lambda b, qi, ki: (b, 0, ki)),    # v_proj (bf16)
                pl.BlockSpec((cqp, C), lambda b, qi, ki: (0, 0)),          # Wq (bf16)
                pl.BlockSpec((cqp, 1), lambda b, qi, ki: (0, 0)),          # bq (f32)
                pl.BlockSpec(memory_space=pltpu.MemorySpace.SMEM),         # gamma
            ],
            out_specs=pl.BlockSpec((1, C, tq), lambda b, qi, ki: (b, 0, qi)),
            scratch_shapes=[
                pltpu.VMEM((cqp, tq), jnp.bfloat16),   # cached q tile
                pltpu.VMEM((1, tq), jnp.float32),      # running max m
                pltpu.VMEM((1, tq), jnp.float32),      # running sum l
                pltpu.VMEM((C, tq), jnp.float32),      # output accumulator
            ],
        ),
        compiler_params=pltpu.CompilerParams(
            dimension_semantics=("parallel", "parallel", "arbitrary"),
            vmem_limit_bytes=vmem_limit,
        ),
    )(x_pad, k_proj, v_proj, wq_b, bq_2d, gamma)

    return out_flat[:, :, :N].reshape(B, C, H, W)


def reference(x, wq, bq, wk, bk, wv, bv, gamma):
    """Pure-JAX f32 reference mirroring the PyTorch forward."""
    B, C, H, W = x.shape
    N = H * W
    xf = x.reshape(B, C, N)
    q = jnp.einsum('oc,bcn->bon', wq, xf) + bq[None, :, None]    # (B, Cq, N)
    k = jnp.einsum('oc,bcn->bon', wk, xf) + bk[None, :, None]    # (B, Cq, N)
    v = jnp.einsum('oc,bcn->bon', wv, xf) + bv[None, :, None]    # (B, C,  N)
    attn = jnp.einsum('bci,bcj->bij', q, k)                      # (B, N, N)
    attn = jax.nn.softmax(attn, axis=-1)
    out = jnp.einsum('bcj,bij->bci', v, attn)                    # (B, C, N)
    return (gamma[0] * out + xf).reshape(B, C, H, W)


def _make_params(C, key):
    Cq = C // 8
    kwq, kbq, kwk, kbk, kwv, kbv = jax.random.split(key, 6)
    wq = 0.1 * jax.random.normal(kwq, (Cq, C), dtype=jnp.float32)
    bq = 0.1 * jax.random.normal(kbq, (Cq,), dtype=jnp.float32)
    wk = 0.1 * jax.random.normal(kwk, (Cq, C), dtype=jnp.float32)
    bk = 0.1 * jax.random.normal(kbk, (Cq,), dtype=jnp.float32)
    wv = 0.1 * jax.random.normal(kwv, (C, C), dtype=jnp.float32)
    bv = 0.1 * jax.random.normal(kbv, (C,), dtype=jnp.float32)
    # PyTorch inits gamma to 0; use a nonzero value so the attention path is checked.
    gamma = jnp.array([0.5], dtype=jnp.float32)
    return wq, bq, wk, bk, wv, bv, gamma


if __name__ == "__main__":
    B, C = 2, 32                        # in_channels=32 -> C//8 = 4
    key = jax.random.PRNGKey(0)
    kx1, kx2, kp = jax.random.split(key, 3)
    params = _make_params(C, kp)

    # --- case 1: N divisible by 128 (16x16), default (single-tile) path ---
    x1 = jax.random.normal(kx1, (B, C, 16, 16), dtype=jnp.float32)
    ref1 = reference(x1, *params)
    out1 = jax.block_until_ready(self_attention(x1, *params))
    assert out1.shape == x1.shape
    assert jnp.allclose(out1, ref1, atol=2.5e-2, rtol=2.5e-2), \
        float(jnp.max(jnp.abs(out1 - ref1)))

    # --- case 2: same input, explicit small tiles -> online-softmax key loop ---
    out2 = jax.block_until_ready(self_attention(x1, *params, tq=128, tk=128))
    assert jnp.allclose(out2, ref1, atol=2.5e-2, rtol=2.5e-2), \
        float(jnp.max(jnp.abs(out2 - ref1)))

    # --- case 3: N NOT divisible by 128 (20x20 -> N=400, padded to 512) ---
    x3 = jax.random.normal(kx2, (B, C, 20, 20), dtype=jnp.float32)
    ref3 = reference(x3, *params)
    out3 = jax.block_until_ready(self_attention(x3, *params, tq=128, tk=128))
    assert out3.shape == x3.shape
    assert jnp.allclose(out3, ref3, atol=2.5e-2, rtol=2.5e-2), \
        float(jnp.max(jnp.abs(out3 - ref3)))

    print("KERNEL_OK")
</pallas_src>

<mosaic_0001>
module attributes {stable_mosaic.version = 11 : i64} {
  func.func @kernel(%arg0: i32, %arg1: i32, %arg2: i32, %arg3: memref<1x32x256xf32, #tpu.memory_space<vmem>>, %arg4: memref<1x16x256xbf16, #tpu.memory_space<vmem>>, %arg5: memref<1x32x256xbf16, #tpu.memory_space<vmem>>, %arg6: memref<16x32xbf16, #tpu.memory_space<vmem>>, %arg7: memref<16x1xf32, #tpu.memory_space<vmem>>, %arg8: memref<1xf32, #tpu.memory_space<smem>>, %arg9: memref<1x32x256xf32, #tpu.memory_space<vmem>>, %arg10: memref<16x256xbf16, #tpu.memory_space<vmem>>, %arg11: memref<1x256xf32, #tpu.memory_space<vmem>>, %arg12: memref<1x256xf32, #tpu.memory_space<vmem>>, %arg13: memref<32x256xf32, #tpu.memory_space<vmem>>) attributes {dimension_semantics = [#tpu.dimension_semantics<parallel>, #tpu.dimension_semantics<parallel>, #tpu.dimension_semantics<arbitrary>], iteration_bounds = array<i64: 2, 1, 1>, scalar_prefetch = 0 : i64, scratch_operands = 4 : i64, tpu.core_type = #tpu.core_type<tc>, window_params = [{transform_indices = @transform_0, window_bounds = array<i64: 1, 32, 256>}, {transform_indices = @transform_1, window_bounds = array<i64: 1, 16, 256>}, {transform_indices = @transform_2, window_bounds = array<i64: 1, 32, 256>}, {pipeline_mode = #tpu.pipeline_mode<synchronous>, transform_indices = @transform_3, window_bounds = array<i64: 16, 32>}, {pipeline_mode = #tpu.pipeline_mode<synchronous>, transform_indices = @transform_4, window_bounds = array<i64: 16, 1>}, {transform_indices = @transform_5, window_bounds = array<i64: 1>}, {transform_indices = @transform_6, window_bounds = array<i64: 1, 32, 256>}]} {
    %c0_i32 = arith.constant 0 : i32
    %0 = arith.cmpi eq, %arg2, %c0_i32 : i32
    %1 = arith.extui %0 : i1 to i32
    %c0_i32_0 = arith.constant 0 : i32
    %2 = arith.cmpi ne, %1, %c0_i32_0 : i32
    scf.if %2 {
      %c0_25 = arith.constant 0 : index
      %c0_26 = arith.constant 0 : index
      %c0_27 = arith.constant 0 : index
      %36 = vector.load %arg3[%c0_25, %c0_26, %c0_27] : memref<1x32x256xf32, #tpu.memory_space<vmem>>, vector<1x32x256xf32>
      %37 = vector.shape_cast %36 : vector<1x32x256xf32> to vector<32x256xf32>
      %38 = arith.truncf %37 : vector<32x256xf32> to vector<32x256xbf16>
      %c0_28 = arith.constant 0 : index
      %c0_29 = arith.constant 0 : index
      %39 = vector.load %arg6[%c0_28, %c0_29] : memref<16x32xbf16, #tpu.memory_space<vmem>>, vector<16x32xbf16>
      %cst_30 = arith.constant dense<0.000000e+00> : vector<16x256xf32>
      %40 = tpu.matmul %39, %38, %cst_30 {dimension_numbers = #tpu.dot_dimension_numbers<[1], [0], [0], [1], [0, 0, 1, 1], [], []>} : vector<16x32xbf16>, vector<32x256xbf16>, vector<16x256xf32> -> vector<16x256xf32>
      %c0_31 = arith.constant 0 : index
      %c0_32 = arith.constant 0 : index
      %41 = vector.load %arg7[%c0_31, %c0_32] : memref<16x1xf32, #tpu.memory_space<vmem>>, vector<16x1xf32>
      %42 = vector.broadcast %41 : vector<16x1xf32> to vector<16x256xf32>
      %43 = arith.addf %40, %42 : vector<16x256xf32>
      %44 = arith.truncf %43 : vector<16x256xf32> to vector<16x256xbf16>
      %c0_33 = arith.constant 0 : index
      %c0_34 = arith.constant 0 : index
      %45 = vector.load %arg10[%c0_33, %c0_34] : memref<16x256xbf16, #tpu.memory_space<vmem>>, vector<16x256xbf16>
      tpu.vector_store %arg10[%c0_33, %c0_34], %44 {strides = array<i32>} : memref<16x256xbf16, #tpu.memory_space<vmem>>, vector<16x256xbf16>,
      %cst_35 = arith.constant -1.000000e+30 : f32
      %46 = vector.broadcast %cst_35 : f32 to vector<1x256xf32>
      %c0_36 = arith.constant 0 : index
      %c0_37 = arith.constant 0 : index
      %47 = vector.load %arg11[%c0_36, %c0_37] : memref<1x256xf32, #tpu.memory_space<vmem>>, vector<1x256xf32>
      tpu.vector_store %arg11[%c0_36, %c0_37], %46 {strides = array<i32>} : memref<1x256xf32, #tpu.memory_space<vmem>>, vector<1x256xf32>,
      %cst_38 = arith.constant 0.000000e+00 : f32
      %48 = vector.broadcast %cst_38 : f32 to vector<1x256xf32>
      %c0_39 = arith.constant 0 : index
      %c0_40 = arith.constant 0 : index
      %49 = vector.load %arg12[%c0_39, %c0_40] : memref<1x256xf32, #tpu.memory_space<vmem>>, vector<1x256xf32>
      tpu.vector_store %arg12[%c0_39, %c0_40], %48 {strides = array<i32>} : memref<1x256xf32, #tpu.memory_space<vmem>>, vector<1x256xf32>,
      %cst_41 = arith.constant 0.000000e+00 : f32
      %50 = vector.broadcast %cst_41 : f32 to vector<32x256xf32>
      %c0_42 = arith.constant 0 : index
      %c0_43 = arith.constant 0 : index
      %51 = vector.load %arg13[%c0_42, %c0_43] : memref<32x256xf32, #tpu.memory_space<vmem>>, vector<32x256xf32>
      tpu.vector_store %arg13[%c0_42, %c0_43], %50 {strides = array<i32>} : memref<32x256xf32, #tpu.memory_space<vmem>>, vector<32x256xf32>,
    } else {
    }
    %c0 = arith.constant 0 : index
    %c0_1 = arith.constant 0 : index
    %c0_2 = arith.constant 0 : index
    %3 = vector.load %arg4[%c0, %c0_1, %c0_2] : memref<1x16x256xbf16, #tpu.memory_space<vmem>>, vector<1x16x256xbf16>
    %4 = vector.shape_cast %3 : vector<1x16x256xbf16> to vector<16x256xbf16>
    %c0_3 = arith.constant 0 : index
    %c0_4 = arith.constant 0 : index
    %c0_5 = arith.constant 0 : index
    %5 = vector.load %arg5[%c0_3, %c0_4, %c0_5] : memref<1x32x256xbf16, #tpu.memory_space<vmem>>, vector<1x32x256xbf16>
    %6 = vector.shape_cast %5 : vector<1x32x256xbf16> to vector<32x256xbf16>
    %c0_6 = arith.constant 0 : index
    %c0_7 = arith.constant 0 : index
    %7 = vector.load %arg10[%c0_6, %c0_7] : memref<16x256xbf16, #tpu.memory_space<vmem>>, vector<16x256xbf16>
    %cst = arith.constant dense<0.000000e+00> : vector<256x256xf32>
    %8 = tpu.matmul %4, %7, %cst {dimension_numbers = #tpu.dot_dimension_numbers<[0], [0], [1], [1], [0, 1, 1, 1], [], []>} : vector<16x256xbf16>, vector<16x256xbf16>, vector<256x256xf32> -> vector<256x256xf32>
    %c0_8 = arith.constant 0 : index
    %c0_9 = arith.constant 0 : index
    %9 = vector.load %arg11[%c0_8, %c0_9] : memref<1x256xf32, #tpu.memory_space<vmem>>, vector<1x256xf32>
    %cst_10 = arith.constant dense<0xFF800000> : vector<256xf32>
    %10 = vector.multi_reduction <maximumf>, %8, %cst_10 [0] : vector<256x256xf32> to vector<256xf32>
    %11 = vector.shape_cast %10 : vector<256xf32> to vector<1x256xf32>
    %12 = arith.maximumf %9, %11 : vector<1x256xf32>
    %13 = arith.subf %9, %12 : vector<1x256xf32>
    %14 = math.exp %13 : vector<1x256xf32>
    %15 = vector.broadcast %12 : vector<1x256xf32> to vector<256x256xf32>
    %16 = arith.subf %8, %15 : vector<256x256xf32>
    %17 = math.exp %16 : vector<256x256xf32>
    %18 = arith.truncf %17 : vector<256x256xf32> to vector<256x256xbf16>
    %c0_11 = arith.constant 0 : index
    %c0_12 = arith.constant 0 : index
    %19 = vector.load %arg12[%c0_11, %c0_12] : memref<1x256xf32, #tpu.memory_space<vmem>>, vector<1x256xf32>
    %20 = arith.mulf %14, %19 : vector<1x256xf32>
    %21 = arith.extf %18 : vector<256x256xbf16> to vector<256x256xf32>
    %cst_13 = arith.constant dense<0.000000e+00> : vector<256xf32>
    %22 = vector.multi_reduction <add>, %21, %cst_13 [0] : vector<256x256xf32> to vector<256xf32>
    %23 = vector.shape_cast %22 : vector<256xf32> to vector<1x256xf32>
    %24 = arith.addf %20, %23 : vector<1x256xf32>
    %c0_14 = arith.constant 0 : index
    %c0_15 = arith.constant 0 : index
    %25 = vector.load %arg12[%c0_14, %c0_15] : memref<1x256xf32, #tpu.memory_space<vmem>>, vector<1x256xf32>
    tpu.vector_store %arg12[%c0_14, %c0_15], %24 {strides = array<i32>} : memref<1x256xf32, #tpu.memory_space<vmem>>, vector<1x256xf32>,
    %c0_16 = arith.constant 0 : index
    %c0_17 = arith.constant 0 : index
    %26 = vector.load %arg13[%c0_16, %c0_17] : memref<32x256xf32, #tpu.memory_space<vmem>>, vector<32x256xf32>
    %27 = vector.broadcast %14 : vector<1x256xf32> to vector<32x256xf32>
    %28 = arith.mulf %27, %26 : vector<32x256xf32>
    %cst_18 = arith.constant dense<0.000000e+00> : vector<32x256xf32>
    %29 = tpu.matmul %6, %18, %cst_18 {dimension_numbers = #tpu.dot_dimension_numbers<[1], [0], [0], [1], [0, 0, 1, 1], [], []>} : vector<32x256xbf16>, vector<256x256xbf16>, vector<32x256xf32> -> vector<32x256xf32>
    %30 = arith.addf %28, %29 : vector<32x256xf32>
    %c0_19 = arith.constant 0 : index
    %c0_20 = arith.constant 0 : index
    %31 = vector.load %arg13[%c0_19, %c0_20] : memref<32x256xf32, #tpu.memory_space<vmem>>, vector<32x256xf32>
    tpu.vector_store %arg13[%c0_19, %c0_20], %30 {strides = array<i32>} : memref<32x256xf32, #tpu.memory_space<vmem>>, vector<32x256xf32>,
    %c0_21 = arith.constant 0 : index
    %c0_22 = arith.constant 0 : index
    %32 = vector.load %arg11[%c0_21, %c0_22] : memref<1x256xf32, #tpu.memory_space<vmem>>, vector<1x256xf32>
    tpu.vector_store %arg11[%c0_21, %c0_22], %12 {strides = array<i32>} : memref<1x256xf32, #tpu.memory_space<vmem>>, vector<1x256xf32>,
    %c0_i32_23 = arith.constant 0 : i32
    %33 = arith.cmpi eq, %arg2, %c0_i32_23 : i32
    %34 = arith.extui %33 : i1 to i32
    %c0_i32_24 = arith.constant 0 : i32
    %35 = arith.cmpi ne, %34, %c0_i32_24 : i32
    scf.if %35 {
      %c0_25 = arith.constant 0 : index
      %36 = memref.load %arg8[%c0_25] : memref<1xf32, #tpu.memory_space<smem>>
      %c0_26 = arith.constant 0 : index
      %c0_27 = arith.constant 0 : index
      %37 = vector.load %arg12[%c0_26, %c0_27] : memref<1x256xf32, #tpu.memory_space<vmem>>, vector<1x256xf32>
      %38 = tpu.reciprocal %37 {approx = true} : vector<1x256xf32> -> vector<1x256xf32>
      %39 = vector.broadcast %36 : f32 to vector<1x256xf32>
      %40 = arith.mulf %39, %38 : vector<1x256xf32>
      %c0_28 = arith.constant 0 : index
      %c0_29 = arith.constant 0 : index
      %41 = vector.load %arg13[%c0_28, %c0_29] : memref<32x256xf32, #tpu.memory_space<vmem>>, vector<32x256xf32>
      %42 = vector.broadcast %40 : vector<1x256xf32> to vector<32x256xf32>
      %43 = arith.mulf %41, %42 : vector<32x256xf32>
      %c0_30 = arith.constant 0 : index
      %c0_31 = arith.constant 0 : index
      %c0_32 = arith.constant 0 : index
      %44 = vector.load %arg3[%c0_30, %c0_31, %c0_32] : memref<1x32x256xf32, #tpu.memory_space<vmem>>, vector<1x32x256xf32>
      %45 = vector.shape_cast %44 : vector<1x32x256xf32> to vector<32x256xf32>
      %46 = arith.addf %43, %45 : vector<32x256xf32>
      %c0_33 = arith.constant 0 : index
      %c0_34 = arith.constant 0 : index
      %c0_35 = arith.constant 0 : index
      %47 = vector.load %arg9[%c0_33, %c0_34, %c0_35] : memref<1x32x256xf32, #tpu.memory_space<vmem>>, vector<1x32x256xf32>
      %48 = vector.shape_cast %47 : vector<1x32x256xf32> to vector<32x256xf32>
      %49 = vector.shape_cast %46 : vector<32x256xf32> to vector<1x32x256xf32>
      tpu.vector_store %arg9[%c0_33, %c0_34, %c0_35], %49 {strides = array<i32>} : memref<1x32x256xf32, #tpu.memory_space<vmem>>, vector<1x32x256xf32>,
    } else {
    }
    return
  }
  func.func @transform_0(%arg0: i32, %arg1: i32, %arg2: i32) -> (i32, i32, i32) {
    %c0_i32 = arith.constant 0 : i32
    %c0_i32_0 = arith.constant 0 : i32
    return %arg0, %c0_i32, %arg1 : i32, i32, i32
  }
  func.func @transform_1(%arg0: i32, %arg1: i32, %arg2: i32) -> (i32, i32, i32) {
    %c0_i32 = arith.constant 0 : i32
    %c0_i32_0 = arith.constant 0 : i32
    return %arg0, %c0_i32, %arg2 : i32, i32, i32
  }
  func.func @transform_2(%arg0: i32, %arg1: i32, %arg2: i32) -> (i32, i32, i32) {
    %c0_i32 = arith.constant 0 : i32
    %c0_i32_0 = arith.constant 0 : i32
    return %arg0, %c0_i32, %arg2 : i32, i32, i32
  }
  func.func @transform_3(%arg0: i32, %arg1: i32, %arg2: i32) -> (i32, i32) {
    %c0_i32 = arith.constant 0 : i32
    %c0_i32_0 = arith.constant 0 : i32
    %c0_i32_1 = arith.constant 0 : i32
    return %c0_i32, %c0_i32_0 : i32, i32
  }
  func.func @transform_4(%arg0: i32, %arg1: i32, %arg2: i32) -> (i32, i32) {
    %c0_i32 = arith.constant 0 : i32
    %c0_i32_0 = arith.constant 0 : i32
    %c0_i32_1 = arith.constant 0 : i32
    return %c0_i32, %c0_i32_0 : i32, i32
  }
  func.func @transform_5(%arg0: i32, %arg1: i32, %arg2: i32) -> i32 {
    %c0_i32 = arith.constant 0 : i32
    %c0_i32_0 = arith.constant 0 : i32
    return %c0_i32 : i32
  }
  func.func @transform_6(%arg0: i32, %arg1: i32, %arg2: i32) -> (i32, i32, i32) {
    %c0_i32 = arith.constant 0 : i32
    %c0_i32_0 = arith.constant 0 : i32
    return %arg0, %c0_i32, %arg1 : i32, i32, i32
  }
}

</mosaic_0001>

<bundles_post_ra>
// kernel: tpu_custom_call.1
= control target key start
LH: loop header
LB: loop body
LE: loop exit
PB: predicated region body
PF: predicated region fallthrough
CT: control target
= control target key end

     0   :  { %s3111_s0 = inlined_call_operand.hbm [shape: f32[2,32,256], index: 0, kind: input, shape index: {}]   ;;  %s3112_s1 = inlined_call_operand.hbm [shape: bf16[2,16,256], index: 1, kind: input, shape index: {}]   ;;  %s3113_s2 = inlined_call_operand.hbm [shape: bf16[2,32,256], index: 2, kind: input, shape index: {}]   ;;  %s3114_s3 = inlined_call_operand.vmem [shape: bf16[16,32], index: 3, kind: input, shape index: {}]   ;;  %s3115_s4 = inlined_call_operand.vmem [shape: f32[16,1], index: 4, kind: input, shape index: {}]   ;;  %s3116_s5 = inlined_call_operand.<no memory space> [shape: f32[1], index: 5, kind: input, shape index: {}]   ;;  %s3117_s6 = inlined_call_operand.hbm [shape: f32[2,32,256], index: 6, kind: output, shape index: {}]  }
   0x1   :  { %3182 = sst [smem:[#allocation50_spill]] %s3111_s0 }
   0x2   :  { %3183 = sst [smem:[#allocation51_spill]] %s3112_s1 }
   0x3   :  { %11 = sst [smem:[#allocation6]] %s3116_s5 }
   0x4   :  { %12 = vsyncpa [#allocation8], 0 }
   0x5   :  { %14 = vsyncpa [#allocation8 + $0x1], 0 }
   0x6   :  { %15 = vsyncpa [#allocation11], 0 }
   0x7   :  { %17 = vsyncpa [#allocation11 + $0x1], 0 }
   0x8   :  { %18 = vsyncpa [#allocation9], 0 }
   0x9   :  { %20 = vsyncpa [#allocation9 + $0x1], 0  ;;  %s2111_s23 = smov 0   ;;  %s2113_s24 = smov 0  }
   0xa   :  { %s2115_s25 = smov 0   ;;  %s2117_s26 = smov 0  }
   0xb   :  { %s2119_s27 = smov 0   ;;  %s2121_s28 = smov 0  }
   0xc LB: > { %3184 = sst [smem:[#allocation17_spill]] %s2045_s25  ;;  %s2142_s5 = sadd.s32 4294967295, %s2057_s28   ;;  %s2057_s28 = sphi %s2121_s28, %s26_s28   ;;  %s2053_s27 = sphi %s2119_s27, %s3349_s27   ;;  %s2049_s26 = sphi %s2117_s26, %s3348_s26   ;;  %s2045_s25 = sphi %s2115_s25, %s3347_s25   ;;  %s2041_s24 = sphi %s2113_s24, %s3346_s24   ;;  %s2037_s23 = sphi %s2111_s23, %s3345_s23  }
   0xd   : > { %s1606_s29 = sadd.s32 4294967294, %s2057_s28   ;;  %s45_s30 = sadd.s32 1, %s2053_s27 }
   0xe   : > { %s54_s7 = sadd.s32 1, %s2045_s25  ;;  %p47_p0 = scmp.ge.s32.totalorder %s45_s30, 2 }
   0xf   : > { %p61_p1 = scmp.ne.s32.totalorder %s2045_s25, %s2041_s24  ;;  %p62_p2 = scmp.eq.s32.totalorder %s2057_s28, 0 }
  0x10   : > { %p67_p3 = scmp.ne.s32.totalorder %s2041_s24, %s2037_s23  ;;  %s3351_s30 = smov (%p47_p0, %s45_s30), 0 }
  0x11   : > { %3185 = sst [smem:[#allocation18_spill]] %s3351_s30  ;;  %p2154_p4 = por %p62_p2, %p61_p1 }
  0x12   : > { %p68_p5 = scmp.eq.s32.totalorder %s2142_s5, 0  ;;  %s49_s9 = ssub.s32 %s2053_s27, %s3351_s30 }
  0x13   : > { %p212_p6 = scmp.eq.s32.totalorder %s2142_s5, 1  ;;  %p52_p7 = scmp.eq.s32.totalorder %s49_s9, 0 }
  0x14   : > { %p2162_p8 = por %p68_p5, %p67_p3  ;;  %p218_p10 = scmp.eq.s32.totalorder %s1606_s29, 1 }
  0x15   : > { %p2166_p9 = por %p212_p6, %p61_p1  ;;  %p1678_p13 = scmp.lt.s32.totalorder %s2057_s28, 2 }
  0x16   : > { %s3187_s10 = scalar_select %p2162_p8, 1, 0 }
  0x17   : > { %s3188_s11 = scalar_select %p2166_p9, 1, 0 }
  0x18   : > { %s2171_s12 = scalar_select %p52_p7, %s2045_s25, %s54_s7  }
  0x19   : > { %p2173_p11 = por %p218_p10, %p67_p3  ;;  %s2180_s14 = sand.u32 1, %s2045_s25  }
  0x1a   : > { %3189 = sst [smem:[#allocation19_spill]] %s2171_s12  ;;  %s270_s15 = sand.u32 1, %s2057_s28  }
  0x1b   : > { %s3190_s13 = scalar_select %p2173_p11, 1, 0 }
  0x1c   : > { %s1612_s16 = sshll.u32 %s2180_s14, 4  ;;  %p2186_p0 = pnand %p1678_p13, %p2154_p4 }
  0x1d   : > { %s1653_s18 = sshll.u32 %s2053_s27, 8  ;;  %s3192_s1 = sld [smem:[#allocation51_spill]] }
  0x1e   : > { %s274_s22 = scalar_lea.vmem [#allocation10], %s1612_s16  ;;  %s2198_s7 = scalar_lea.sflag [#allocation11], %s270_s15 }
  0x1f   : > { %s283_s29 = sshll.u32 %s274_s22, 4  ;;  %p2204_p2 = pneg %p2186_p0  ;;  %s2196_s29 = int_to_ptr.vmem [resolvable:$true] %s283_s29 }
  0x23   : > { %s2194_s21 = scalar_lea.hbm %s3192_s1, %s1653_s18  ;;  %s1886_s16 = scalar_lea.hbm %s3192_s1, 512 }
  0x24   : > { %s1881_s8 = scalar_lea.hbm %s2194_s21, 256  ;;  %p1887_p5 = scmp.lt.u32.totalorder %s2194_s21, %s3192_s1 }
  0x25   : > { %p1882_p1 = scmp.ne.s32.totalorder %s2194_s21, %s1881_s8  ;;  %p1888_p6 = scmp.lt.u32.totalorder %s1886_s16, %s1881_s8 }
  0x26   : > { %p1890_p10 = scmp.lt.u32.totalorder %s1881_s8, %s2194_s21 }
  0x27   : > { %p1884_p3 = pnand %p2204_p2, %p1882_p1  ;;  %p1889_p7 = por %p1888_p6, %p1887_p5 }
  0x29   : > { %p1885_p4 = pneg %p1884_p3  ;;  %p1891_p13 = por %p1890_p10, %p1889_p7 }
  0x2b   : > { %p1892_p12 = pnand %p1891_p13, %p1885_p4 }
  0x2d   : > { %1895 = shalt.err (!%p1892_p12)
}
  0x2e   : > { %s1896_s15 = scalar_lea.vmem %s2196_s29, 256  ;;  %s2059_s18 = smov [#allocation10]  }
  0x2f   : > { %p1897_p1 = scmp.ne.s32.totalorder %s2196_s29, %s1896_s15  ;;  %s1901_s19 = sshll.u32 %s2059_s18, 4  ;;  %s1902_s19 = int_to_ptr.vmem [resolvable:$false] %s1901_s19 }
  0x30   : > { %s1903_s20 = scalar_lea.vmem %s1902_s19, 512  ;;  %p1904_p9 = scmp.lt.s32.totalorder %s2196_s29, %s1902_s19 }
  0x31   : > { %p1899_p3 = pnand %p1897_p1, %p2204_p2  ;;  %p1905_p8 = scmp.lt.s32.totalorder %s1903_s20, %s1896_s15 }
  0x33   : > { %p1900_p11 = pneg %p1899_p3  ;;  %p1906_p5 = por %p1905_p8, %p1904_p9 }
  0x35   : > { %p1907_p6 = pnand %p1906_p5, %p1900_p11 }
  0x37   : > { %1910 = shalt.err (!%p1907_p6)
}
  0x38   : > { %s3121_s8 = smov 128   ;;  %s3122_s16 = smov 8  }
  0x39   : > { %1670 = dma.hbm_to_vmem [thread:$0]  (!%p2186_p0), %s2194_s21, 256, %s2196_s29, %s2198_s7, %s3121_s8, %s3121_s8, %s3122_s16  }
  0x3a   : > { %p1618_p8 = scmp.ge.s32.totalorder %s2057_s28, 1  ;;  %p314_p9 = scmp.lt.s32.totalorder %s2057_s28, 3 }
  0x3b   : > { %s1609_s15 = sshll.u32 %s2180_s14, 6  ;;  %s1652_s18 = sshll.u32 %s2053_s27, 10 }
  0x3c   : > { %p2233_p11 = pnand %p1618_p8, %p314_p9  ;;  %s3195_s0 = sld [smem:[#allocation50_spill]] }
  0x3d   : > { %s251_s30 = scalar_lea.vmem [#allocation7], %s1609_s15  ;;  %s248_s21 = scalar_lea.sflag [#allocation8], %s2180_s14 }
  0x3e   : > { %s3194_s22 = scalar_select %p2233_p11, 1, 0 }
  0x3f   : > { %s260_s12 = sshll.u32 %s251_s30, 4  ;;  %s2244_s12 = int_to_ptr.vmem [resolvable:$true] %s260_s12 }
  0x42   : > { %s2242_s1 = scalar_lea.hbm %s3195_s0, %s1652_s18  ;;  %s1916_s19 = scalar_lea.hbm %s3195_s0, 2048 }
  0x43   : > { %s1911_s29 = scalar_lea.hbm %s2242_s1, 1024  ;;  %p1917_p10 = scmp.lt.u32.totalorder %s2242_s1, %s3195_s0 }
  0x44   : > { %p1912_p12 = scmp.ne.s32.totalorder %s2242_s1, %s1911_s29  ;;  %p1918_p13 = scmp.lt.u32.totalorder %s1916_s19, %s1911_s29 }
  0x45   : > { %p1920_p3 = scmp.lt.u32.totalorder %s1911_s29, %s2242_s1 }
  0x46   : > { %p1914_p4 = pnand %p1912_p12, %p2204_p2  ;;  %p1919_p1 = por %p1918_p13, %p1917_p10 }
  0x48   : > { %p1915_p7 = pneg %p1914_p4  ;;  %p1921_p5 = por %p1920_p3, %p1919_p1 }
  0x4a   : > { %p1922_p6 = pnand %p1921_p5, %p1915_p7 }
  0x4c   : > { %1925 = shalt.err (!%p1922_p6)
}
  0x4d   : > { %s1926_s30 = scalar_lea.vmem %s2244_s12, 1024  ;;  %s2062_s8 = smov [#allocation7]  }
  0x4e   : > { %p1927_p8 = scmp.ne.s32.totalorder %s2244_s12, %s1926_s30  ;;  %s1931_s16 = sshll.u32 %s2062_s8, 4  ;;  %s1932_s16 = int_to_ptr.vmem [resolvable:$false] %s1931_s16 }
  0x4f   : > { %s1933_s15 = scalar_lea.vmem %s1932_s16, 2048  ;;  %p1934_p4 = scmp.lt.s32.totalorder %s2244_s12, %s1932_s16 }
  0x50   : > { %p1929_p9 = pnand %p1927_p8, %p2204_p2  ;;  %p1935_p11 = scmp.lt.s32.totalorder %s1933_s15, %s1926_s30 }
  0x52   : > { %p1930_p12 = pneg %p1929_p9  ;;  %p1936_p10 = por %p1935_p11, %p1934_p4 }
  0x54   : > { %p1937_p13 = pnand %p1936_p10, %p1930_p12 }
  0x56   : > { %1940 = shalt.err (!%p1937_p13)
}
  0x57   : > { %s2063_s29 = smov 256   ;;  %s2064_s19 = smov 16  }
  0x58   : > { %1667 = dma.hbm_to_vmem [thread:$0]  (!%p2186_p0), %s2242_s1, 1024, %s2244_s12, %s248_s21, %s2063_s29, %s2063_s29, %s2064_s19  }
  0x59   : > { %s1615_s18 = sshll.u32 %s2180_s14, 5  ;;  %s1654_s20 = sshll.u32 %s2053_s27, 9 }
  0x5a   : > { %s2275_s30 = scalar_lea.hbm %s3113_s2, %s1654_s20  ;;  %s297_s15 = scalar_lea.vmem [#allocation12], %s1615_s18 }
  0x5b   : > { %s306_s0 = sshll.u32 %s297_s15, 4  ;;  %s1941_s25 = scalar_lea.hbm %s2275_s30, 512  ;;  %s2277_s0 = int_to_ptr.vmem [resolvable:$true] %s306_s0 }
  0x5c   : > { %p1942_p11 = scmp.ne.s32.totalorder %s2275_s30, %s1941_s25  ;;  %s1946_s14 = scalar_lea.hbm %s3113_s2, 1024 }
  0x5d   : > { %p1947_p3 = scmp.lt.u32.totalorder %s2275_s30, %s3113_s2  ;;  %p1948_p5 = scmp.lt.u32.totalorder %s1946_s14, %s1941_s25 }
  0x5e   : > { %p1944_p7 = pnand %p1942_p11, %p2204_p2  ;;  %p1950_p8 = scmp.lt.u32.totalorder %s1941_s25, %s2275_s30 }
  0x5f   : > { %p1949_p6 = por %p1948_p5, %p1947_p3 }
  0x60   : > { %p1945_p1 = pneg %p1944_p7 }
  0x61   : > { %p1951_p9 = por %p1950_p8, %p1949_p6 }
  0x63   : > { %p1952_p12 = pnand %p1951_p9, %p1945_p1 }
  0x65   : > { %1955 = shalt.err (!%p1952_p12)
}
  0x66   : > { %s1956_s19 = scalar_lea.vmem %s2277_s0, 512  ;;  %s2065_s18 = smov [#allocation12]  }
  0x67   : > { %p1957_p4 = scmp.ne.s32.totalorder %s2277_s0, %s1956_s19  ;;  %s1961_s20 = sshll.u32 %s2065_s18, 4  ;;  %s1962_s20 = int_to_ptr.vmem [resolvable:$false] %s1961_s20 }
  0x68   : > { %s1963_s8 = scalar_lea.vmem %s1962_s20, 1024  ;;  %p1964_p11 = scmp.lt.s32.totalorder %s2277_s0, %s1962_s20 }
  0x69   : > { %p1959_p10 = pnand %p1957_p4, %p2204_p2  ;;  %p1965_p7 = scmp.lt.s32.totalorder %s1963_s8, %s1956_s19 }
  0x6b   : > { %p1960_p13 = pneg %p1959_p10  ;;  %p1966_p3 = por %p1965_p7, %p1964_p11 }
  0x6d   : > { %p1967_p5 = pnand %p1966_p3, %p1960_p13 }
  0x6f   : > { %1970 = shalt.err (!%p1967_p5)
}
  0x70   : > { %s3196_s25 = smov 8   ;;  %s3197_s16 = smov 128  }
  0x71   : > { %1673 = dma.hbm_to_vmem [thread:$0]  (!%p2186_p0), %s2275_s30, 512, %s2277_s0, %s2198_s7, %s3197_s16, %s3197_s16, %s3196_s25  }
  0x72   : > { %p3198_p2 = scmp.ne.s32.totalorder %s3194_s22, 0 }
  0x74   : > { %318 = sbr.rel (%p3198_p2) target bundleno = 1062 (0x426), region = 44 }
  0x7b   : > { %s2307_s9 = sand.u32 1, %s2041_s24   ;;  %p3199_p1 = scmp.ne.s32.totalorder %s3187_s10, 0 }
  0x7c   : > { %s1619_s15 = sshll.u32 %s2307_s9, 6  ;;  %s321_s1 = scalar_lea.sflag [#allocation8], %s2307_s9 }
  0x7d   : > { %s2313_s17 = scalar_lea.vmem [#allocation7], %s1619_s15 }
  0x7e   : > { %2024 = dma.done.wait (%p3199_p1), %s321_s1, 1024  }
  0x7f   : > { %2026 = vsyncadd (%p3199_p1), %s321_s1, 4294966272  ;;  %s329_s0 = sand.u32 1, %s2142_s5   ;;  %s1620_s7 = sshll.u32 %s2307_s9, 4 }
  0x80   : > { %s330_s22 = scalar_lea.sflag [#allocation11], %s329_s0  ;;  %s2321_s30 = scalar_lea.vmem [#allocation10], %s1620_s7 }
  0x81   : > { %2028 = dma.done.wait (%p3199_p1), %s330_s22, 768  }
  0x82   : > { %2030 = vsyncadd (%p3199_p1), %s330_s22, 4294966528  ;;  %v2066_v0 = vmov 0   ;;  %v391_v1 = vld [vmem:[%s2313_s17 + $0x8] sm:$0xff]  ;;  %v393_v2 = vld [vmem:[%s2313_s17 + $0x18] sm:$0xff]  ;;  %vm421_vm0 = vcmask 261120   ;;  %vm536_vm1 = vcmask 130048   ;;  %v3124_v50 = vlaneseq }
  0x83   : > { %457 = vmatprep.mubr.bf16.mxu0 %v2066_v0  ;;  %1738 = vset.pattern.permute.xlu0 %v2066_v0  ;;  %v390_v3 = vld [vmem:[%s2313_s17] sm:$0xff]  ;;  %v399_v4 = vpack.c.bf16 %v393_v2, %v391_v1  ;;  %v392_v5 = vld [vmem:[%s2313_s17 + $0x10] sm:$0xff]  ;;  %v395_v6 = vld [vmem:[%s2313_s17 + $0x28] sm:$0xff]  ;;  %v3200_v54 = vmov 0  ;;  %v2067_v57 = vmov -1e+30  }
  0x84   : > { %617 = vmatprep.mubr.bf16.mxu1 %v2066_v0  ;;  %v397_v7 = vld [vmem:[%s2313_s17 + $0x38] sm:$0xff]  ;;  %v398_v8 = vpack.c.bf16 %v392_v5, %v390_v3  ;;  %v394_v10 = vld [vmem:[%s2313_s17 + $0x20] sm:$0xff]  ;;  %v396_v11 = vld [vmem:[%s2313_s17 + $0x30] sm:$0xff]  ;;  %vm2395_vm2 = vcmp.lt.s32.totalorder %v3124_v50, 256  ;;  %v2068_v58 = vmov 0.0   ;;  %s1621_s19 = sshll.u32 %s2307_s9, 5 }
  0x85   : > { %v401_v9 = vpack.c.bf16 %v397_v7, %v395_v6  ;;  %425 = vmatprep.subr.bf16.mxu0 %v399_v4  ;;  %v404_v12 = vld [vmem:[%s3115_s4] sm:$0xff]  ;;  %v400_v13 = vpack.c.bf16 %v396_v11, %v394_v10  ;;  %v405_v14 = vld [vmem:[%s3115_s4 + $0x8] sm:$0xff]  ;;  %v3201_v54 = vsel %vm2395_vm2, 4294967295, %v3200_v54  ;;  %476 = vst.msk [vmem:[#allocation3] sm:$0x3] %vm2395_vm2, %v2067_v57  ;;  %s2606_s18 = scalar_lea.vmem [#allocation12], %s1621_s19 }
  0x86   : > { %426 = vmatpush1.bf16.msra.mxu0 %v398_v8  ;;  %408 = vperm.xlu0 %1738, %v404_v12   ;;  %v1740_v15 = vld [vmem:[%s2321_s30] ss:$8 sps:$4 sm:$0xff]   ;;  %v1742_v17 = vld [vmem:[%s2321_s30 + $0x4] ss:$8 sps:$4 sm:$0xff]   ;;  %3202 = vst [vmem:[#allocation20_spill] sm:$0xff] %v3201_v54  ;;  %s1394_s20 = sld [smem:[#allocation6]] }
  0x87   : > { %427 = vmatprep.subr.bf16.mxu0 %v401_v9  ;;  %v1739_v16 = vld [vmem:[%s3114_s3] sm:$0xff]   ;;  %504 = vxpose.xlu1.c.b16.start.end [1/1] (short) %v1740_v15, 128  ;;  %477 = vst.msk [vmem:[#allocation4] sm:$0x3] %vm2395_vm2, %v2068_v58  ;;  %s3041_s8 = scalar_lea.vmem [#allocation13], %s1619_s15  ;;  %s1655_s25 = sshll.u32 %s2049_s26, 10 }
  0x88   : > { %s1466_s16 = sshll.u32 %s3041_s8, 4  ;;  %s3057_s0 = scalar_lea.hbm %s3117_s6, %s1655_s25  ;;  %s3059_s16 = int_to_ptr.vmem [resolvable:$true] %s1466_s16 }
  0x89   : > { %s1451_s26 = scalar_lea.sflag [#allocation9], %s2307_s9  ;;  %p3339_p6 = scmp.ne.s32.totalorder %s3188_s11, 0 }
  0x8a   : > { %428 = vmatpush1.bf16.msra.mxu0 %v400_v13  ;;  %413 = vperm.xlu0 %1738, %v405_v14   ;;  %s2070_s7 = smov [#allocation13]  }
  0x8b   : > { %s1975_s22 = sshll.u32 %s2070_s7, 4  ;;  %s1976_s22 = int_to_ptr.vmem [resolvable:$false] %s1975_s22 }
  0x8c   : > { %s1977_s30 = scalar_lea.vmem %s1976_s22, 2048  ;;  %p1978_p12 = scmp.lt.s32.totalorder %s3059_s16, %s1976_s22 }
  0x8d   : > { %1624 = vmatmul.mubr.msk.bf16.vlgmr.msra.gmra.mrb[0].mxu0 %vm421_vm0, %v1739_v16 }
  0xa4   : > { %520 = vxpose.xlu1.c.b16.start.end [1/1] (short) %v1742_v17, 128 }
  0xed   : > { %v512_v30 = vpop.trf.xlu1 }
  0xf1   : > { %v513_v31 = vpop.trf.xlu1 }
  0xf5   : > { %v514_v32 = vpop.trf.xlu1 }
  0xf9   : > { %v515_v33 = vpop.trf.xlu1 }
  0xfd   : > { %v516_v34 = vpop.trf.xlu1 }
 0x101   : > { %v517_v35 = vpop.trf.xlu1 }
 0x105   : > { %v409_v18 = vpop.permute.xlu0 %408  ;;  %v518_v36 = vpop.trf.xlu1 }
 0x109   : > { %v414_v21 = vpop.permute.xlu0 %413  ;;  %v519_v37 = vpop.trf.xlu1 }
 0x10d   : > { %v528_v38 = vpop.trf.xlu1 }
 0x111   : > { %v529_v39 = vpop.trf.xlu1 }
 0x115   : > { %v530_v40 = vpop.trf.xlu1 }
 0x119   : > { %v531_v41 = vpop.trf.xlu1 }
 0x11d   : > { %v532_v42 = vpop.trf.xlu1 }
 0x121   : > { %v533_v43 = vpop.trf.xlu1 }
 0x125   : > { %v534_v44 = vpop.trf.xlu1 }
 0x129   : > { %v535_v45 = vpop.trf.xlu1 }
 0x160   : > { %v459_v19 = vpop.f32.mrb[0].mxu0 }
 0x161   : > { %v461_v20 = vpop.f32.mrb[1].mxu0  ;;  %v460_v23 = vadd.f32 %v459_v19, %v409_v18 }
 0x162   : > { %v463_v22 = vpop.f32.mrb[2].mxu0  ;;  %v462_v26 = vadd.f32 %v461_v20, %v409_v18 }
 0x163   : > { %v464_v24 = vadd.f32 %v463_v22, %v414_v21  ;;  %v465_v25 = vpop.f32.mrb[3].mxu0 }
 0x164   : > { %v466_v27 = vadd.f32 %v465_v25, %v414_v21 }
 0x165   : > { %v468_v28 = vpack.c.bf16 %v464_v24, %v460_v23 }
 0x166   : > { %v469_v29 = vpack.c.bf16 %v466_v27, %v462_v26 }
 0x168   : > { %585 = vmatprep.subr.bf16.mxu1 %v469_v29 }
 0x169   : > { %586 = vmatpush1.bf16.msra.mxu1 %v468_v28 }
 0x16c   : > { %1627 = vmatmul.mubr.msk.bf16.vlgmr.msra.gmra.mrb[0].mxu1 %vm536_vm1, %v512_v30 }
 0x16d   : > { %627 = vmatprep.mubr.bf16.mxu1 %v2066_v0 }
 0x174   : > { %1628 = vmatmul.mubr.msk.bf16.gmra.mrb[4].mxu1 %vm536_vm1, %v513_v31 }
 0x175   : > { %637 = vmatprep.mubr.bf16.mxu1 %v2066_v0 }
 0x17c   : > { %1629 = vmatmul.mubr.msk.bf16.gmra.mrb[8].mxu1 %vm536_vm1, %v514_v32 }
 0x17d   : > { %647 = vmatprep.mubr.bf16.mxu1 %v2066_v0 }
 0x184   : > { %1630 = vmatmul.mubr.msk.bf16.gmra.mrb[12].mxu1 %vm536_vm1, %v515_v33 }
 0x185   : > { %657 = vmatprep.mubr.bf16.mxu1 %v2066_v0 }
 0x18c   : > { %1631 = vmatmul.mubr.msk.bf16.gmra.mrb[16].mxu1 %vm536_vm1, %v516_v34 }
 0x18d   : > { %667 = vmatprep.mubr.bf16.mxu1 %v2066_v0 }
 0x194   : > { %1632 = vmatmul.mubr.msk.bf16.gmra.mrb[20].mxu1 %vm536_vm1, %v517_v35 }
 0x195   : > { %677 = vmatprep.mubr.bf16.mxu1 %v2066_v0 }
 0x19c   : > { %1633 = vmatmul.mubr.msk.bf16.gmra.mrb[24].mxu1 %vm536_vm1, %v518_v36 }
 0x19d   : > { %687 = vmatprep.mubr.bf16.mxu1 %v2066_v0 }
 0x1a4   : > { %1634 = vmatmul.mubr.msk.bf16.gmra.mrb[28].mxu1 %vm536_vm1, %v519_v37 }
 0x1a5   : > { %697 = vmatprep.mubr.bf16.mxu1 %v2066_v0 }
 0x1ac   : > { %1635 = vmatmul.mubr.msk.bf16.gmra.mrb[32].mxu1 %vm536_vm1, %v528_v38 }
 0x1ad   : > { %707 = vmatprep.mubr.bf16.mxu1 %v2066_v0 }
 0x1b4   : > { %1636 = vmatmul.mubr.msk.bf16.gmra.mrb[36].mxu1 %vm536_vm1, %v529_v39 }
 0x1b5   : > { %717 = vmatprep.mubr.bf16.mxu1 %v2066_v0 }
 0x1bc   : > { %1637 = vmatmul.mubr.msk.bf16.gmra.mrb[40].mxu1 %vm536_vm1, %v530_v40 }
 0x1bd   : > { %727 = vmatprep.mubr.bf16.mxu1 %v2066_v0 }
 0x1c4   : > { %1638 = vmatmul.mubr.msk.bf16.gmra.mrb[44].mxu1 %vm536_vm1, %v531_v41 }
 0x1c5   : > { %737 = vmatprep.mubr.bf16.mxu1 %v2066_v0 }
 0x1cc   : > { %1639 = vmatmul.mubr.msk.bf16.gmra.mrb[48].mxu1 %vm536_vm1, %v532_v42 }
 0x1cd   : > { %747 = vmatprep.mubr.bf16.mxu1 %v2066_v0 }
 0x1d4   : > { %1640 = vmatmul.mubr.msk.bf16.gmra.mrb[52].mxu1 %vm536_vm1, %v533_v43 }
 0x1d5   : > { %757 = vmatprep.mubr.bf16.mxu1 %v2066_v0 }
 0x1dc   : > { %1641 = vmatmul.mubr.msk.bf16.gmra.mrb[56].mxu1 %vm536_vm1, %v534_v44 }
 0x1dd   : > { %767 = vmatprep.mubr.bf16.mxu1 %v2066_v0 }
 0x1e4   : > { %1642 = vmatmul.mubr.msk.bf16.gmra.mrb[60].mxu1 %vm536_vm1, %v535_v45 }
 0x23f   : > { %v2380_v46 = vpop.f32.mrb[0].mxu1 }
 0x240   : > { %v2382_v47 = vpop.f32.mrb[1].mxu1 }
 0x241   : > { %v2384_v48 = vpop.f32.mrb[2].mxu1 }
 0x242   : > { %v2386_v49 = vpop.f32.mrb[3].mxu1 }
 0x247   : > { %v2388_v51 = vpop.f32.mrb[4].mxu1 }
 0x248   : > { %v779_v52 = vmax.f32 %v2380_v46, %v2388_v51  ;;  %v2392_v53 = vpop.f32.mrb[5].mxu1 }
 0x249   : > { %v816_v55 = vmax.f32 %v2382_v47, %v2392_v53  ;;  %v2401_v56 = vpop.f32.mrb[6].mxu1 }
 0x24a   : > { %v780_v59 = vmax.f32 %v2384_v48, %v2401_v56  ;;  %v2409_v60 = vpop.f32.mrb[7].mxu1 }
 0x24b   : > { %v817_v61 = vmax.f32 %v2386_v49, %v2409_v60 }
 0x24f   : > { %v2413_v62 = vpop.f32.mrb[8].mxu1 }
 0x250   : > { %v781_v63 = vmax.f32 %v779_v52, %v2413_v62  ;;  %v2416_v0 = vpop.f32.mrb[9].mxu1 }
 0x251   : > { %v818_v1 = vmax.f32 %v816_v55, %v2416_v0  ;;  %v2419_v2 = vpop.f32.mrb[10].mxu1 }
 0x252   : > { %v782_v3 = vmax.f32 %v780_v59, %v2419_v2  ;;  %v2422_v4 = vpop.f32.mrb[11].mxu1 }
 0x253   : > { %v819_v5 = vmax.f32 %v817_v61, %v2422_v4 }
 0x257   : > { %v2425_v6 = vpop.f32.mrb[12].mxu1 }
 0x258   : > { %v783_v7 = vmax.f32 %v781_v63, %v2425_v6  ;;  %v2428_v8 = vpop.f32.mrb[13].mxu1 }
 0x259   : > { %v820_v9 = vmax.f32 %v818_v1, %v2428_v8  ;;  %v2431_v10 = vpop.f32.mrb[14].mxu1 }
 0x25a   : > { %v784_v11 = vmax.f32 %v782_v3, %v2431_v10  ;;  %v2434_v12 = vpop.f32.mrb[15].mxu1 }
 0x25b   : > { %v821_v13 = vmax.f32 %v819_v5, %v2434_v12 }
 0x25f   : > { %v2437_v14 = vpop.f32.mrb[16].mxu1 }
 0x260   : > { %v785_v15 = vmax.f32 %v783_v7, %v2437_v14  ;;  %v2440_v16 = vpop.f32.mrb[17].mxu1 }
 0x261   : > { %v822_v17 = vmax.f32 %v820_v9, %v2440_v16  ;;  %v2443_v18 = vpop.f32.mrb[18].mxu1 }
 0x262   : > { %v786_v19 = vmax.f32 %v784_v11, %v2443_v18  ;;  %v2446_v20 = vpop.f32.mrb[19].mxu1 }
 0x263   : > { %v823_v21 = vmax.f32 %v821_v13, %v2446_v20 }
 0x267   : > { %v2449_v22 = vpop.f32.mrb[20].mxu1 }
 0x268   : > { %v787_v23 = vmax.f32 %v785_v15, %v2449_v22  ;;  %v2452_v24 = vpop.f32.mrb[21].mxu1 }
 0x269   : > { %v824_v25 = vmax.f32 %v822_v17, %v2452_v24  ;;  %v2455_v26 = vpop.f32.mrb[22].mxu1 }
 0x26a   : > { %v788_v27 = vmax.f32 %v786_v19, %v2455_v26  ;;  %v2458_v28 = vpop.f32.mrb[23].mxu1 }
 0x26b   : > { %v825_v29 = vmax.f32 %v823_v21, %v2458_v28 }
 0x26f   : > { %v2461_v30 = vpop.f32.mrb[24].mxu1 }
 0x270   : > { %v789_v31 = vmax.f32 %v787_v23, %v2461_v30  ;;  %v2464_v32 = vpop.f32.mrb[25].mxu1 }
 0x271   : > { %v826_v33 = vmax.f32 %v824_v25, %v2464_v32  ;;  %v2467_v34 = vpop.f32.mrb[26].mxu1 }
 0x272   : > { %v790_v35 = vmax.f32 %v788_v27, %v2467_v34  ;;  %v2470_v36 = vpop.f32.mrb[27].mxu1 }
 0x273   : > { %v827_v37 = vmax.f32 %v825_v29, %v2470_v36 }
 0x277   : > { %v2473_v38 = vpop.f32.mrb[28].mxu1 }
 0x278   : > { %v791_v39 = vmax.f32 %v789_v31, %v2473_v38  ;;  %v2476_v40 = vpop.f32.mrb[29].mxu1 }
 0x279   : > { %v828_v41 = vmax.f32 %v826_v33, %v2476_v40  ;;  %v2479_v42 = vpop.f32.mrb[30].mxu1 }
 0x27a   : > { %v792_v43 = vmax.f32 %v790_v35, %v2479_v42  ;;  %v2482_v44 = vpop.f32.mrb[31].mxu1 }
 0x27b   : > { %v829_v45 = vmax.f32 %v827_v37, %v2482_v44 }
 0x27f   : > { %v2485_v52 = vpop.f32.mrb[32].mxu1 }
 0x280   : > { %v793_v55 = vmax.f32 %v791_v39, %v2485_v52  ;;  %v2488_v57 = vpop.f32.mrb[33].mxu1 }
 0x281   : > { %v830_v58 = vmax.f32 %v828_v41, %v2488_v57  ;;  %v2491_v59 = vpop.f32.mrb[34].mxu1 }
 0x282   : > { %v794_v61 = vmax.f32 %v792_v43, %v2491_v59  ;;  %v2494_v63 = vpop.f32.mrb[35].mxu1 }
 0x283   : > { %v831_v1 = vmax.f32 %v829_v45, %v2494_v63 }
 0x287   : > { %v2497_v3 = vpop.f32.mrb[36].mxu1 }
 0x288   : > { %v795_v5 = vmax.f32 %v793_v55, %v2497_v3  ;;  %v2500_v7 = vpop.f32.mrb[37].mxu1 }
 0x289   : > { %v832_v9 = vmax.f32 %v830_v58, %v2500_v7  ;;  %v2503_v11 = vpop.f32.mrb[38].mxu1 }
 0x28a   : > { %v796_v13 = vmax.f32 %v794_v61, %v2503_v11  ;;  %v2506_v15 = vpop.f32.mrb[39].mxu1 }
 0x28b   : > { %3203 = vst [vmem:[#allocation21_spill] sm:$0xff] %v2506_v15  ;;  %v833_v17 = vmax.f32 %v831_v1, %v2506_v15 }
 0x28f   : > { %v2509_v19 = vpop.f32.mrb[40].mxu1 }
 0x290   : > { %3204 = vst [vmem:[#allocation22_spill] sm:$0xff] %v2509_v19  ;;  %v797_v21 = vmax.f32 %v795_v5, %v2509_v19  ;;  %v2512_v23 = vpop.f32.mrb[41].mxu1 }
 0x291   : > { %3205 = vst [vmem:[#allocation23_spill] sm:$0xff] %v2512_v23  ;;  %v834_v25 = vmax.f32 %v832_v9, %v2512_v23  ;;  %v2515_v27 = vpop.f32.mrb[42].mxu1 }
 0x292   : > { %3206 = vst [vmem:[#allocation24_spill] sm:$0xff] %v2515_v27  ;;  %v798_v29 = vmax.f32 %v796_v13, %v2515_v27  ;;  %v2518_v31 = vpop.f32.mrb[43].mxu1 }
 0x293   : > { %3207 = vst [vmem:[#allocation25_spill] sm:$0xff] %v2518_v31  ;;  %v835_v33 = vmax.f32 %v833_v17, %v2518_v31 }
 0x297   : > { %v2521_v35 = vpop.f32.mrb[44].mxu1 }
 0x298   : > { %3208 = vst [vmem:[#allocation26_spill] sm:$0xff] %v2521_v35  ;;  %v799_v37 = vmax.f32 %v797_v21, %v2521_v35  ;;  %v2524_v39 = vpop.f32.mrb[45].mxu1 }
 0x299   : > { %3209 = vst [vmem:[#allocation27_spill] sm:$0xff] %v2524_v39  ;;  %v836_v41 = vmax.f32 %v834_v25, %v2524_v39  ;;  %v2527_v43 = vpop.f32.mrb[46].mxu1 }
 0x29a   : > { %3210 = vst [vmem:[#allocation28_spill] sm:$0xff] %v2527_v43  ;;  %v800_v45 = vmax.f32 %v798_v29, %v2527_v43  ;;  %v2530_v55 = vpop.f32.mrb[47].mxu1 }
 0x29b   : > { %3211 = vst [vmem:[#allocation29_spill] sm:$0xff] %v2530_v55  ;;  %v837_v58 = vmax.f32 %v835_v33, %v2530_v55 }
 0x29f   : > { %v2533_v61 = vpop.f32.mrb[48].mxu1 }
 0x2a0   : > { %3212 = vst [vmem:[#allocation30_spill] sm:$0xff] %v2533_v61  ;;  %v801_v1 = vmax.f32 %v799_v37, %v2533_v61  ;;  %v2536_v5 = vpop.f32.mrb[49].mxu1 }
 0x2a1   : > { %3213 = vst [vmem:[#allocation31_spill] sm:$0xff] %v2536_v5  ;;  %v838_v9 = vmax.f32 %v836_v41, %v2536_v5  ;;  %v2539_v13 = vpop.f32.mrb[50].mxu1 }
 0x2a2   : > { %3214 = vst [vmem:[#allocation32_spill] sm:$0xff] %v2539_v13  ;;  %v802_v17 = vmax.f32 %v800_v45, %v2539_v13  ;;  %v2542_v21 = vpop.f32.mrb[51].mxu1 }
 0x2a3   : > { %3215 = vst [vmem:[#allocation33_spill] sm:$0xff] %v2542_v21  ;;  %v839_v25 = vmax.f32 %v837_v58, %v2542_v21 }
 0x2a7   : > { %v2545_v29 = vpop.f32.mrb[52].mxu1 }
 0x2a8   : > { %3216 = vst [vmem:[#allocation34_spill] sm:$0xff] %v2545_v29  ;;  %v803_v33 = vmax.f32 %v801_v1, %v2545_v29  ;;  %v2548_v50 = vpop.f32.mrb[53].mxu1 }
 0x2a9   : > { %3217 = vst [vmem:[#allocation35_spill] sm:$0xff] %v2548_v50  ;;  %v840_v37 = vmax.f32 %v838_v9, %v2548_v50  ;;  %v2551_v61 = vpop.f32.mrb[54].mxu1 }
 0x2aa   : > { %3218 = vst [vmem:[#allocation36_spill] sm:$0xff] %v2551_v61  ;;  %v804_v41 = vmax.f32 %v802_v17, %v2551_v61  ;;  %v2554_v5 = vpop.f32.mrb[55].mxu1 }
 0x2ab   : > { %3219 = vst [vmem:[#allocation37_spill] sm:$0xff] %v2554_v5  ;;  %v841_v45 = vmax.f32 %v839_v25, %v2554_v5 }
 0x2af   : > { %v2557_v13 = vpop.f32.mrb[56].mxu1 }
 0x2b0   : > { %3220 = vst [vmem:[#allocation38_spill] sm:$0xff] %v2557_v13  ;;  %v805_v58 = vmax.f32 %v803_v33, %v2557_v13  ;;  %v2560_v21 = vpop.f32.mrb[57].mxu1 }
 0x2b1   : > { %3221 = vst [vmem:[#allocation39_spill] sm:$0xff] %v2560_v21  ;;  %v842_v1 = vmax.f32 %v840_v37, %v2560_v21  ;;  %v2563_v29 = vpop.f32.mrb[58].mxu1 }
 0x2b2   : > { %3222 = vst [vmem:[#allocation40_spill] sm:$0xff] %v2563_v29  ;;  %v806_v9 = vmax.f32 %v804_v41, %v2563_v29  ;;  %v2566_v50 = vpop.f32.mrb[59].mxu1 }
 0x2b3   : > { %3223 = vst [vmem:[#allocation41_spill] sm:$0xff] %v2566_v50  ;;  %v843_v17 = vmax.f32 %v841_v45, %v2566_v50  ;;  %v2069_v50 = vmov 1966171168  }
 0x2b4   : > { %v857_v31 = vunpack.c.l.s4 %v2069_v50 }
 0x2b7   : > { %v2569_v61 = vpop.f32.mrb[60].mxu1 }
 0x2b8   : > { %3224 = vst [vmem:[#allocation42_spill] sm:$0xff] %v2569_v61  ;;  %v807_v25 = vmax.f32 %v805_v58, %v2569_v61  ;;  %v2572_v5 = vpop.f32.mrb[61].mxu1  ;;  %v3251_v54 = vld [vmem:[#allocation39_spill] sm:$0xff] }
 0x2b9   : > { %3225 = vst [vmem:[#allocation43_spill] sm:$0xff] %v2572_v5  ;;  %v844_v33 = vmax.f32 %v842_v1, %v2572_v5  ;;  %v2575_v13 = vpop.f32.mrb[62].mxu1  ;;  %v858_v1 = vunpack.c.0.s8 %v857_v31  ;;  %v3227_v5 = vlaneseq }
 0x2ba   : > { %3226 = vst [vmem:[#allocation44_spill] sm:$0xff] %v2575_v13  ;;  %v808_v37 = vmax.f32 %v806_v9, %v2575_v13  ;;  %v775_v21 = vpop.f32.mrb[63].mxu1 }
 0x2bb   : > { %v845_v55 = vmax.f32 %v843_v17, %v775_v21  ;;  %v860_v19 = vshrl.u32 %v3227_v5, 7 }
 0x2bc   : > { %v809_v43 = vmax.f32 %v807_v25, %v808_v37 }
 0x2bd   : > { %v846_v41 = vmax.f32 %v844_v33, %v845_v55  ;;  %v2579_v25 = vsub.s32 %v858_v1, %v860_v19  ;;  %v3237_v1 = vld [vmem:[#allocation25_spill] sm:$0xff] }
 0x2be   : > { %v810_v29 = vrot.slane %v809_v43, 4 }
 0x2bf   : > { %v847_v39 = vrot.slane %v846_v41, 4  ;;  %3228 = vst [vmem:[#allocation45_spill] sm:$0xff] %v2579_v25 }
 0x2c0   : > { %v811_v35 = vmax.f32 %v809_v43, %v810_v29  ;;  %v2585_v29 = vsub.s32 0, %v860_v19 }
 0x2c1   : > { %v848_v45 = vmax.f32 %v846_v41, %v847_v39  ;;  %v2582_v39 = vld [vmem:[#allocation3] sm:$0x3] }
 0x2c2   : > { %v812_v27 = vrot.slane %v811_v35, 2  ;;  %3229 = vst [vmem:[#allocation46_spill] sm:$0xff] %v2582_v39  ;;  %3230 = vst [vmem:[#allocation47_spill] sm:$0xff] %v2585_v29 }
 0x2c3   : > { %v849_v58 = vrot.slane %v848_v45, 2 }
 0x2c4   : > { %v813_v61 = vmax.f32 %v811_v35, %v812_v27  ;;  %v2587_v27 = vsub.s32 1, %v860_v19 }
 0x2c5   : > { %v850_v23 = vmax.f32 %v848_v45, %v849_v58  ;;  %v3255_v58 = vld [vmem:[#allocation43_spill] sm:$0xff] }
 0x2c6   : > { %v814_v15 = vrot.slane %v813_v61, 1  ;;  %3231 = vst [vmem:[#allocation48_spill] sm:$0xff] %v2587_v27 }
 0x2c7   : > { %v851_v9 = vrot.slane %v850_v23, 1 }
 0x2c8   : > { %v815_v13 = vmax.f32 %v813_v61, %v814_v15  ;;  %v3235_v15 = vld [vmem:[#allocation23_spill] sm:$0xff] }
 0x2c9   : > { %v852_v17 = vmax.f32 %v850_v23, %v851_v9  ;;  %v3238_v9 = vld [vmem:[#allocation26_spill] sm:$0xff] }
 0x2cb   : > { %v855_v55 = vcombine.low %v815_v13, %v852_v17  ;;  %v1745_v13 = vld [vmem:[%s2606_s18 + $0x4] ss:$8 sps:$4 sm:$0xff]   ;;  %v3239_v17 = vld [vmem:[#allocation27_spill] sm:$0xff] }
 0x2cc   : > { %1353 = vmatprep.mubr.bf16.mxu0 %v1745_v13  ;;  %v3236_v13 = vld [vmem:[#allocation24_spill] sm:$0xff] }
 0x2cd   : > { %v862_v43 = vrot.slane %v855_v55, %v2579_v25  ;;  %v3240_v55 = vld [vmem:[#allocation28_spill] sm:$0xff] }
 0x2cf   : > { %v869_v50 = vrot.slane %v862_v43, %v2579_v25  ;;  %v3252_v25 = vld [vmem:[#allocation40_spill] sm:$0xff] }
 0x2d1   : > { %v2590_v31 = vmax.f32 %v2582_v39, %v869_v50  ;;  %v3234_v50 = vld [vmem:[#allocation22_spill] sm:$0xff] }
 0x2d2   : > { %v3254_v39 = vld [vmem:[#allocation42_spill] sm:$0xff] }
 0x2d3   : > { %3232 = vst [vmem:[#allocation49_spill] sm:$0xff] %v2590_v31  ;;  %v2597_v23 = vrot.slane %v2590_v31, %v2585_v29  ;;  %v2601_v35 = vrot.slane %v2590_v31, %v2587_v27  ;;  %1390 = vst.msk [vmem:[#allocation3] sm:$0x3] %vm2395_vm2, %v2590_v31 }
 0x2d5   : > { %v949_v19 = vsub.f32 %v775_v21, %v2601_v35  ;;  %v3257_v45 = vsub.f32 %v2380_v46, %v2597_v23  ;;  %v3258_v41 = vsub.f32 %v2382_v47, %v2601_v35  ;;  %v3259_v33 = vsub.f32 %v2384_v48, %v2597_v23 }
 0x2d6   : > { %v3260_v5 = vsub.f32 %v2386_v49, %v2601_v35  ;;  %v3261_v27 = vsub.f32 %v2388_v51, %v2597_v23  ;;  %v3262_v46 = vsub.f32 %v2392_v53, %v2601_v35  ;;  %v3263_v48 = vsub.f32 %v2401_v56, %v2597_v23 }
 0x2d7   : > { %v1076_v43 = vmul.f32 1.442695, %v949_v19  ;;  %v3233_v19 = vld [vmem:[#allocation21_spill] sm:$0xff]  ;;  %v950_v29 = vmul.f32 1.442695, %v3257_v45  ;;  %v3264_v49 = vsub.f32 %v2409_v60, %v2601_v35  ;;  %v3265_v51 = vsub.f32 %v2413_v62, %v2597_v23 }
 0x2d8   : > { %v952_v37 = vmul.f32 1.442695, %v3258_v41  ;;  %v954_v31 = vmul.f32 1.442695, %v3259_v33  ;;  %v956_v61 = vmul.f32 1.442695, %v3260_v5  ;;  %v3266_v53 = vsub.f32 %v2416_v0, %v2601_v35 }
 0x2d9   : > { %1749 = vpow2.f32 %v1076_v43  ;;  %v958_v21 = vmul.f32 1.442695, %v3261_v27  ;;  %v960_v47 = vmul.f32 1.442695, %v3262_v46  ;;  %v962_v33 = vmul.f32 1.442695, %v3263_v48 }
 0x2da   : > { %1751 = vpow2.f32 %v950_v29  ;;  %v964_v5 = vmul.f32 1.442695, %v3264_v49  ;;  %v966_v29 = vmul.f32 1.442695, %v3265_v51  ;;  %v968_v27 = vmul.f32 1.442695, %v3266_v53 }
 0x2db   : > { %1753 = vpow2.f32 %v952_v37  ;;  %v3267_v56 = vsub.f32 %v2419_v2, %v2597_v23  ;;  %v3268_v60 = vsub.f32 %v2422_v4, %v2601_v35  ;;  %v3269_v62 = vsub.f32 %v2425_v6, %v2597_v23 }
 0x2dc   : > { %1755 = vpow2.f32 %v954_v31  ;;  %v3270_v0 = vsub.f32 %v2428_v8, %v2601_v35  ;;  %v3271_v2 = vsub.f32 %v2431_v10, %v2597_v23  ;;  %v3272_v4 = vsub.f32 %v2434_v12, %v2601_v35 }
 0x2dd   : > { %1757 = vpow2.f32 %v956_v61  ;;  %v970_v31 = vmul.f32 1.442695, %v3267_v56  ;;  %v972_v61 = vmul.f32 1.442695, %v3268_v60  ;;  %v974_v37 = vmul.f32 1.442695, %v3269_v62 }
 0x2de   : > { %1759 = vpow2.f32 %v958_v21  ;;  %v976_v45 = vmul.f32 1.442695, %v3270_v0  ;;  %v978_v21 = vmul.f32 1.442695, %v3271_v2  ;;  %v980_v43 = vmul.f32 1.442695, %v3272_v4 }
 0x2df   : > { %1761 = vpow2.f32 %v960_v47  ;;  %v3273_v6 = vsub.f32 %v2437_v14, %v2597_v23  ;;  %v3274_v48 = vsub.f32 %v2440_v16, %v2601_v35  ;;  %v3275_v8 = vsub.f32 %v2443_v18, %v2597_v23 }
 0x2e0   : > { %1763 = vpow2.f32 %v962_v33  ;;  %v3276_v12 = vsub.f32 %v2446_v20, %v2601_v35  ;;  %v3277_v51 = vsub.f32 %v2449_v22, %v2597_v23  ;;  %v3278_v14 = vsub.f32 %v2452_v24, %v2601_v35 }
 0x2e1   : > { %1765 = vpow2.f32 %v964_v5  ;;  %v982_v47 = vmul.f32 1.442695, %v3273_v6  ;;  %v984_v33 = vmul.f32 1.442695, %v3274_v48  ;;  %v986_v49 = vmul.f32 1.442695, %v3275_v8 }
 0x2e2   : > { %1767 = vpow2.f32 %v966_v29  ;;  %v988_v5 = vmul.f32 1.442695, %v3276_v12  ;;  %v990_v29 = vmul.f32 1.442695, %v3277_v51  ;;  %v992_v53 = vmul.f32 1.442695, %v3278_v14 }
 0x2e3   : > { %v2775_v41 = vpop.eup %1749  ;;  %1769 = vpow2.f32 %v968_v27  ;;  %v3279_v18 = vsub.f32 %v2455_v26, %v2597_v23  ;;  %v3280_v56 = vsub.f32 %v2458_v28, %v2601_v35  ;;  %v3281_v20 = vsub.f32 %v2461_v30, %v2597_v23 }
 0x2e4   : > { %v1752_v46 = vpop.eup %1751  ;;  %1771 = vpow2.f32 %v970_v31  ;;  %v3282_v24 = vsub.f32 %v2464_v32, %v2601_v35  ;;  %v3283_v62 = vsub.f32 %v2467_v34, %v2597_v23  ;;  %v3284_v26 = vsub.f32 %v2470_v36, %v2601_v35 }
 0x2e5   : > { %v1754_v10 = vpop.eup %1753  ;;  %1773 = vpow2.f32 %v972_v61  ;;  %v994_v27 = vmul.f32 1.442695, %v3279_v18  ;;  %v996_v31 = vmul.f32 1.442695, %v3280_v56  ;;  %v998_v60 = vmul.f32 1.442695, %v3281_v20 }
 0x2e6   : > { %v1756_v16 = vpop.eup %1755  ;;  %1775 = vpow2.f32 %v974_v37  ;;  %v1000_v61 = vmul.f32 1.442695, %v3282_v24  ;;  %v2819_v37 = vmul.f32 1.442695, %v3283_v62  ;;  %v2824_v28 = vmul.f32 1.442695, %v3284_v26 }
 0x2e7   : > { %v1758_v22 = vpop.eup %1757  ;;  %1777 = vpow2.f32 %v976_v45  ;;  %v3285_v30 = vsub.f32 %v2473_v38, %v2597_v23  ;;  %v3286_v32 = vsub.f32 %v2476_v40, %v2601_v35  ;;  %v3287_v34 = vsub.f32 %v2479_v42, %v2597_v23 }
 0x2e8   : > { %v1760_v0 = vpop.eup %1759  ;;  %1779 = vpow2.f32 %v978_v21  ;;  %v3288_v21 = vsub.f32 %v2482_v44, %v2601_v35  ;;  %v3289_v38 = vsub.f32 %v2485_v52, %v2597_v23  ;;  %v3290_v40 = vsub.f32 %v2488_v57, %v2601_v35 }
 0x2e9   : > { %v2829_v45 = vmul.f32 1.442695, %v3285_v30  ;;  %v2834_v2 = vmul.f32 1.442695, %v3286_v32  ;;  %v2839_v4 = vmul.f32 1.442695, %v3287_v34  ;;  %v1762_v36 = vpop.eup %1761  ;;  %1781 = vpow2.f32 %v980_v43 }
 0x2ea   : > { %v2844_v6 = vmul.f32 1.442695, %v3288_v21  ;;  %v2849_v48 = vmul.f32 1.442695, %v3289_v38  ;;  %v2854_v8 = vmul.f32 1.442695, %v3290_v40  ;;  %v1764_v42 = vpop.eup %1763  ;;  %1783 = vpow2.f32 %v982_v47 }
 0x2eb   : > { %v3291_v43 = vsub.f32 %v2491_v59, %v2597_v23  ;;  %v3292_v44 = vsub.f32 %v2494_v63, %v2601_v35  ;;  %v3293_v52 = vsub.f32 %v2497_v3, %v2597_v23  ;;  %v1766_v57 = vpop.eup %1765  ;;  %1785 = vpow2.f32 %v984_v33 }
 0x2ec   : > { %v3294_v47 = vsub.f32 %v2500_v7, %v2601_v35  ;;  %v3295_v59 = vsub.f32 %v2503_v11, %v2597_v23  ;;  %v3296_v63 = vsub.f32 %v3233_v19, %v2601_v35  ;;  %v1768_v3 = vpop.eup %1767  ;;  %1787 = vpow2.f32 %v986_v49 }
 0x2ed   : > { %v2859_v12 = vmul.f32 1.442695, %v3291_v43  ;;  %v2864_v51 = vmul.f32 1.442695, %v3292_v44  ;;  %v2869_v14 = vmul.f32 1.442695, %v3293_v52  ;;  %v3297_v33 = vsub.f32 %v3234_v50, %v2597_v23  ;;  %v1770_v19 = vpop.eup %1769 }
 0x2ee   : > { %v2874_v18 = vmul.f32 1.442695, %v3294_v47  ;;  %v2879_v56 = vmul.f32 1.442695, %v3295_v59  ;;  %v2884_v20 = vmul.f32 1.442695, %v3296_v63  ;;  %v3298_v7 = vsub.f32 %v3235_v15, %v2601_v35  ;;  %v1772_v34 = vpop.eup %1771 }
 0x2ef   : > { %v2889_v24 = vmul.f32 1.442695, %v3297_v33  ;;  %v3299_v11 = vsub.f32 %v3236_v13, %v2597_v23  ;;  %1789 = vpow2.f32 %v988_v5  ;;  %v1079_v30 = vpack.c.bf16 %v1758_v22, %v1754_v10  ;;  %v1774_v40 = vpop.eup %1773  ;;  %v3304_v33 = vld [vmem:[#allocation29_spill] sm:$0xff] }
 0x2f0   : > { %v2894_v62 = vmul.f32 1.442695, %v3298_v7  ;;  %v1078_v32 = vpack.c.bf16 %v1756_v16, %v1752_v46  ;;  %v1081_v49 = vpack.c.bf16 %v1766_v57, %v1762_v36  ;;  %1791 = vpow2.f32 %v990_v29  ;;  %v1776_v10 = vpop.eup %1775 }
 0x2f1   : > { %v2899_v26 = vmul.f32 1.442695, %v3299_v11  ;;  %v3300_v50 = vsub.f32 %v3237_v1, %v2601_v35  ;;  %v3301_v15 = vsub.f32 %v3238_v9, %v2597_v23  ;;  %v1080_v13 = vpack.c.bf16 %v1764_v42, %v1760_v0  ;;  %1321 = vmatprep.subr.bf16.mxu0 %v1079_v30  ;;  %v1778_v0 = vpop.eup %1777 }
 0x2f2   : > { %1793 = vpow2.f32 %v992_v53  ;;  %v1113_v43 = vunpack.c.l.bf16 %v1079_v30  ;;  %v1115_v5 = vunpack.c.h.bf16 %v1079_v30  ;;  %v1112_v46 = vunpack.c.l.bf16 %v1078_v32  ;;  %1322 = vmatpush1.bf16.msra.mxu0 %v1078_v32  ;;  %v1780_v44 = vpop.eup %1779 }
 0x2f3   : > { %v2904_v21 = vmul.f32 1.442695, %v3300_v50  ;;  %v2909_v38 = vmul.f32 1.442695, %v3301_v15  ;;  %1795 = vpow2.f32 %v994_v27  ;;  %v3302_v29 = vsub.f32 %v3239_v17, %v2601_v35  ;;  %1323 = vmatprep.subr.bf16.mxu0 %v1081_v49  ;;  %v1782_v57 = vpop.eup %1781 }
 0x2f4   : > { %v3303_v16 = vsub.f32 %v3240_v55, %v2597_v23  ;;  %v1114_v22 = vunpack.c.h.bf16 %v1078_v32  ;;  %1797 = vpow2.f32 %v996_v31  ;;  %v1213_v53 = vadd.f32 %v1115_v5, %v1113_v43  ;;  %v1784_v63 = vpop.eup %1783 }
 0x2f5   : > { %v2914_v1 = vmul.f32 1.442695, %v3302_v29  ;;  %v1117_v36 = vunpack.c.l.bf16 %v1081_v49  ;;  %v1116_v42 = vunpack.c.l.bf16 %v1080_v13  ;;  %1799 = vpow2.f32 %v998_v60  ;;  %v1786_v60 = vpop.eup %1785 }
 0x2f6   : > { %v2919_v9 = vmul.f32 1.442695, %v3303_v16  ;;  %v1176_v27 = vadd.f32 %v1114_v22, %v1112_v46  ;;  %v1083_v52 = vpack.c.bf16 %v1774_v40, %v1770_v19  ;;  %v1082_v17 = vpack.c.bf16 %v1772_v34, %v1768_v3  ;;  %1324 = vmatpush1.bf16.msra.mxu0 %v1080_v13  ;;  %v3306_v3 = vld [vmem:[#allocation30_spill] sm:$0xff]  ;;  %v3308_v46 = vld [vmem:[#allocation31_spill] sm:$0xff] }
 0x2f7   : > { %1801 = vpow2.f32 %v1000_v61  ;;  %v1119_v47 = vunpack.c.h.bf16 %v1081_v49  ;;  %v1214_v59 = vadd.f32 %v1213_v53, %v1117_v36  ;;  %v1084_v55 = vpack.c.bf16 %v1780_v44, %v1776_v10 }
 0x2f8   : > { %1803 = vpow2.f32 %v2819_v37  ;;  %v3305_v31 = vsub.f32 %v3304_v33, %v2601_v35  ;;  %v1118_v11 = vunpack.c.h.bf16 %v1080_v13  ;;  %v1177_v30 = vadd.f32 %v1176_v27, %v1116_v42  ;;  %1325 = vmatprep.subr.bf16.mxu0 %v1083_v52  ;;  %v1788_v37 = vpop.eup %1787  ;;  %v3310_v42 = vld [vmem:[#allocation32_spill] sm:$0xff] }
 0x2f9   : > { %1805 = vpow2.f32 %v2824_v28  ;;  %v3307_v61 = vsub.f32 %v3306_v3, %v2597_v23  ;;  %v1215_v32 = vadd.f32 %v1214_v59, %v1119_v47  ;;  %v1121_v49 = vunpack.c.l.bf16 %v1083_v52  ;;  %v1790_v40 = vpop.eup %1789 }
 0x2fa   : > { %v2925_v7 = vmul.f32 1.442695, %v3305_v31  ;;  %1807 = vpow2.f32 %v2829_v45  ;;  %v1178_v34 = vadd.f32 %v1177_v30, %v1118_v11  ;;  %v1120_v50 = vunpack.c.l.bf16 %v1082_v17  ;;  %v1792_v5 = vpop.eup %1791  ;;  %1326 = vmatpush1.bf16.msra.mxu0 %v1082_v17  ;;  %v3312_v11 = vld [vmem:[#allocation33_spill] sm:$0xff] }
 0x2fb   : > { %v2931_v19 = vmul.f32 1.442695, %v3307_v61  ;;  %v1085_v15 = vpack.c.bf16 %v1782_v57, %v1778_v0  ;;  %1809 = vpow2.f32 %v2834_v2  ;;  %v1123_v13 = vunpack.c.h.bf16 %v1083_v52 }
 0x2fc   : > { %v1216_v43 = vadd.f32 %v1215_v32, %v1121_v49  ;;  %v1086_v28 = vpack.c.bf16 %v1788_v37, %v1784_v63  ;;  %1811 = vpow2.f32 %v2839_v4  ;;  %v3309_v10 = vsub.f32 %v3308_v46, %v2601_v35  ;;  %v1794_v45 = vpop.eup %1793  ;;  %v3314_v32 = vld [vmem:[#allocation34_spill] sm:$0xff]  ;;  %v3316_v46 = vld [vmem:[#allocation35_spill] sm:$0xff] }
 0x2fd   : > { %v1122_v16 = vunpack.c.h.bf16 %v1082_v17  ;;  %v1179_v22 = vadd.f32 %v1178_v34, %v1120_v50  ;;  %1813 = vpow2.f32 %v2844_v6  ;;  %v1125_v53 = vunpack.c.l.bf16 %v1085_v15  ;;  %1327 = vmatprep.subr.bf16.mxu0 %v1085_v15  ;;  %v1796_v36 = vpop.eup %1795 }
 0x2fe   : > { %v2939_v29 = vmul.f32 1.442695, %v3309_v10  ;;  %v1217_v0 = vadd.f32 %v1216_v43, %v1123_v13  ;;  %v1087_v2 = vpack.c.bf16 %v1790_v40, %v1786_v60  ;;  %1815 = vpow2.f32 %v2849_v48  ;;  %v1798_v57 = vpop.eup %1797  ;;  %1328 = vmatpush1.bf16.msra.mxu0 %v1084_v55 }
 0x2ff   : > { %v3311_v4 = vsub.f32 %v3310_v42, %v2597_v23  ;;  %v1180_v27 = vadd.f32 %v1179_v22, %v1122_v16  ;;  %v1124_v52 = vunpack.c.l.bf16 %v1084_v55  ;;  %1817 = vpow2.f32 %v2854_v8  ;;  %v1800_v59 = vpop.eup %1799 }
 0x300   : > { %v1127_v17 = vunpack.c.h.bf16 %v1085_v15  ;;  %v1218_v47 = vadd.f32 %v1217_v0, %v1125_v53  ;;  %v1126_v6 = vunpack.c.h.bf16 %v1084_v55  ;;  %1819 = vpow2.f32 %v2859_v12  ;;  %1329 = vmatprep.subr.bf16.mxu0 %v1087_v2  ;;  %v3318_v0 = vld [vmem:[#allocation36_spill] sm:$0xff] }
 0x301   : > { %v2946_v44 = vmul.f32 1.442695, %v3311_v4  ;;  %v1181_v63 = vadd.f32 %v1180_v27, %v1124_v52  ;;  %v1089_v33 = vpack.c.bf16 %v1798_v57, %v1794_v45  ;;  %v1088_v48 = vpack.c.bf16 %v1796_v36, %v1792_v5  ;;  %v1802_v31 = vpop.eup %1801 }
 0x302   : > { %1821 = vpow2.f32 %v2864_v51  ;;  %v3313_v30 = vsub.f32 %v3312_v11, %v2601_v35  ;;  %v1219_v3 = vadd.f32 %v1218_v47, %v1127_v17  ;;  %v1129_v8 = vunpack.c.l.bf16 %v1087_v2  ;;  %v1804_v61 = vpop.eup %1803  ;;  %1330 = vmatpush1.bf16.msra.mxu0 %v1086_v28  ;;  %v3320_v47 = vld [vmem:[#allocation37_spill] sm:$0xff] }
 0x303   : > { %1823 = vpow2.f32 %v2869_v14  ;;  %v3315_v12 = vsub.f32 %v3314_v32, %v2597_v23  ;;  %v1182_v49 = vadd.f32 %v1181_v63, %v1126_v6  ;;  %v1128_v37 = vunpack.c.l.bf16 %v1086_v28  ;;  %v1806_v34 = vpop.eup %1805  ;;  %1331 = vmatprep.subr.bf16.mxu0 %v1089_v33 }
 0x304   : > { %v2954_v60 = vmul.f32 1.442695, %v3313_v30  ;;  %1825 = vpow2.f32 %v2874_v18  ;;  %v1131_v51 = vunpack.c.h.bf16 %v1087_v2  ;;  %v1220_v50 = vadd.f32 %v1219_v3, %v1129_v8  ;;  %v1808_v40 = vpop.eup %1807 }
 0x305   : > { %v2960_v55 = vmul.f32 1.442695, %v3315_v12  ;;  %v1130_v15 = vunpack.c.h.bf16 %v1086_v28  ;;  %1827 = vpow2.f32 %v2879_v56  ;;  %v1183_v13 = vadd.f32 %v1182_v49, %v1128_v37  ;;  %v1810_v5 = vpop.eup %1809 }
 0x306   : > { %v1091_v43 = vpack.c.bf16 %v1806_v34, %v1802_v31  ;;  %v1090_v14 = vpack.c.bf16 %v1804_v61, %v1800_v59  ;;  %1829 = vpow2.f32 %v2884_v20  ;;  %v3317_v10 = vsub.f32 %v3316_v46, %v2601_v35  ;;  %v1812_v45 = vpop.eup %1811  ;;  %1332 = vmatpush1.bf16.msra.mxu0 %v1088_v48  ;;  %v3322_v31 = vld [vmem:[#allocation38_spill] sm:$0xff] }
 0x307   : > { %v1221_v22 = vadd.f32 %v1220_v50, %v1131_v51  ;;  %v1133_v18 = vunpack.c.l.bf16 %v1089_v33  ;;  %1831 = vpow2.f32 %v2889_v24  ;;  %v3319_v56 = vsub.f32 %v3318_v0, %v2597_v23  ;;  %v1814_v36 = vpop.eup %1813 }
 0x308   : > { %v2968_v16 = vmul.f32 1.442695, %v3317_v10  ;;  %v1184_v53 = vadd.f32 %v1183_v13, %v1130_v15  ;;  %v1132_v2 = vunpack.c.l.bf16 %v1088_v48  ;;  %1833 = vpow2.f32 %v2894_v62  ;;  %v1816_v27 = vpop.eup %1815  ;;  %1333 = vmatprep.subr.bf16.mxu0 %v1091_v43 }
 0x309   : > { %v2974_v28 = vmul.f32 1.442695, %v3319_v56  ;;  %v1135_v20 = vunpack.c.h.bf16 %v1089_v33  ;;  %v1222_v42 = vadd.f32 %v1221_v22, %v1133_v18  ;;  %v1134_v4 = vunpack.c.h.bf16 %v1088_v48  ;;  %v1818_v17 = vpop.eup %1817 }
 0x30a   : > { %1835 = vpow2.f32 %v2899_v26  ;;  %v1185_v52 = vadd.f32 %v1184_v53, %v1132_v2  ;;  %v1093_v57 = vpack.c.bf16 %v1814_v36, %v1810_v5  ;;  %v1092_v24 = vpack.c.bf16 %v1812_v45, %v1808_v40  ;;  %v1820_v33 = vpop.eup %1819  ;;  %1334 = vmatpush1.bf16.msra.mxu0 %v1090_v14 }
 0x30b   : > { %1837 = vpow2.f32 %v2904_v21  ;;  %v3321_v6 = vsub.f32 %v3320_v47, %v2601_v35  ;;  %v1223_v63 = vadd.f32 %v1222_v42, %v1135_v20  ;;  %v1137_v62 = vunpack.c.l.bf16 %v1091_v43 }
 0x30c   : > { %1839 = vpow2.f32 %v2909_v38  ;;  %v3323_v26 = vsub.f32 %v3322_v31, %v2597_v23  ;;  %v1186_v11 = vadd.f32 %v1185_v52, %v1134_v4  ;;  %v1136_v30 = vunpack.c.l.bf16 %v1090_v14  ;;  %v1822_v3 = vpop.eup %1821  ;;  %1335 = vmatprep.subr.bf16.mxu0 %v1093_v57 }
 0x30d   : > { %v2982_v59 = vmul.f32 1.442695, %v3321_v6  ;;  %1841 = vpow2.f32 %v2914_v1  ;;  %v1139_v21 = vunpack.c.h.bf16 %v1091_v43  ;;  %v1224_v8 = vadd.f32 %v1223_v63, %v1137_v62  ;;  %v1824_v32 = vpop.eup %1823  ;;  %v3330_v62 = vld [vmem:[#allocation44_spill] sm:$0xff] }
 0x30e   : > { %v2988_v48 = vmul.f32 1.442695, %v3323_v26  ;;  %v1138_v61 = vunpack.c.h.bf16 %v1090_v14  ;;  %1843 = vpow2.f32 %v2919_v9  ;;  %v1187_v12 = vadd.f32 %v1186_v11, %v1136_v30  ;;  %v1826_v37 = vpop.eup %1825  ;;  %1336 = vmatpush1.bf16.msra.mxu0 %v1092_v24 }
 0x30f   : > { %v1095_v49 = vpack.c.bf16 %v1822_v3, %v1818_v17  ;;  %v1094_v38 = vpack.c.bf16 %v1820_v33, %v1816_v27  ;;  %1845 = vpow2.f32 %v2925_v7  ;;  %v3324_v34 = vsub.f32 %v3251_v54, %v2601_v35  ;;  %v1828_v1 = vpop.eup %1827 }
 0x310   : > { %v1225_v50 = vadd.f32 %v1224_v8, %v1139_v21  ;;  %v1141_v15 = vunpack.c.l.bf16 %v1093_v57  ;;  %1847 = vpow2.f32 %v2931_v19  ;;  %v3325_v9 = vsub.f32 %v3252_v25, %v2597_v23  ;;  %v1830_v14 = vpop.eup %1829  ;;  %v3326_v25 = vld [vmem:[#allocation41_spill] sm:$0xff] }
 0x311   : > { %v1064_v51 = vmul.f32 1.442695, %v3324_v34  ;;  %v1188_v13 = vadd.f32 %v1187_v12, %v1138_v61  ;;  %v1140_v43 = vunpack.c.l.bf16 %v1092_v24  ;;  %1849 = vpow2.f32 %v2939_v29  ;;  %v1832_v54 = vpop.eup %1831  ;;  %1337 = vmatprep.subr.bf16.mxu0 %v1095_v49 }
 0x312   : > { %v1066_v40 = vmul.f32 1.442695, %v3325_v9  ;;  %v1143_v7 = vunpack.c.h.bf16 %v1093_v57  ;;  %v1226_v5 = vadd.f32 %v1225_v50, %v1141_v15  ;;  %v1142_v46 = vunpack.c.h.bf16 %v1092_v24  ;;  %v1834_v19 = vpop.eup %1833  ;;  %1338 = vmatpush1.bf16.msra.mxu0 %v1094_v38 }
 0x313   : > { %1851 = vpow2.f32 %v2946_v44  ;;  %v1189_v10 = vadd.f32 %v1188_v13, %v1140_v43  ;;  %v1097_v22 = vpack.c.bf16 %v1830_v14, %v1826_v37  ;;  %v1096_v18 = vpack.c.bf16 %v1828_v1, %v1824_v32 }
 0x314   : > { %1853 = vpow2.f32 %v2954_v60  ;;  %v3327_v45 = vsub.f32 %v3326_v25, %v2601_v35  ;;  %v1227_v56 = vadd.f32 %v1226_v5, %v1143_v7  ;;  %v1145_v53 = vunpack.c.l.bf16 %v1095_v49  ;;  %v1836_v29 = vpop.eup %1835 }
 0x315   : > { %1855 = vpow2.f32 %v2960_v55  ;;  %v3328_v44 = vsub.f32 %v3254_v39, %v2597_v23  ;;  %v1190_v36 = vadd.f32 %v1189_v10, %v1142_v46  ;;  %v1144_v20 = vunpack.c.l.bf16 %v1094_v38  ;;  %v1838_v42 = vpop.eup %1837  ;;  %1339 = vmatprep.subr.bf16.mxu0 %v1097_v22 }
 0x316   : > { %v1068_v0 = vmul.f32 1.442695, %v3327_v45  ;;  %1857 = vpow2.f32 %v2968_v16  ;;  %v1147_v60 = vunpack.c.h.bf16 %v1095_v49  ;;  %v1228_v4 = vadd.f32 %v1227_v56, %v1145_v53  ;;  %v1840_v52 = vpop.eup %1839  ;;  %1340 = vmatpush1.bf16.msra.mxu0 %v1096_v18 }
 0x317   : > { %v1070_v2 = vmul.f32 1.442695, %v3328_v44  ;;  %v1146_v27 = vunpack.c.h.bf16 %v1094_v38  ;;  %1859 = vpow2.f32 %v2974_v28  ;;  %v1191_v57 = vadd.f32 %v1190_v36, %v1144_v20  ;;  %v1842_v55 = vpop.eup %1841 }
 0x318   : > { %v1099_v24 = vpack.c.bf16 %v1838_v42, %v1834_v19  ;;  %v1098_v17 = vpack.c.bf16 %v1836_v29, %v1832_v54  ;;  %1861 = vpow2.f32 %v2982_v59  ;;  %v3329_v39 = vsub.f32 %v3255_v58, %v2601_v35  ;;  %v1844_v16 = vpop.eup %1843 }
 0x319   : > { %v1229_v6 = vadd.f32 %v1228_v4, %v1147_v60  ;;  %v1149_v63 = vunpack.c.l.bf16 %v1097_v22  ;;  %1863 = vpow2.f32 %v2988_v48  ;;  %v3331_v28 = vsub.f32 %v3330_v62, %v2597_v23  ;;  %v1846_v11 = vpop.eup %1845 }
 0x31a   : > { %v1072_v47 = vmul.f32 1.442695, %v3329_v39  ;;  %v1192_v31 = vadd.f32 %v1191_v57, %v1146_v27  ;;  %v1148_v26 = vunpack.c.l.bf16 %v1096_v18  ;;  %1865 = vpow2.f32 %v1064_v51  ;;  %v1848_v21 = vpop.eup %1847  ;;  %1341 = vmatprep.subr.bf16.mxu0 %v1099_v24 }
 0x31b   : > { %v1074_v33 = vmul.f32 1.442695, %v3331_v28  ;;  %v1151_v30 = vunpack.c.h.bf16 %v1097_v22  ;;  %v1230_v59 = vadd.f32 %v1229_v6, %v1149_v63  ;;  %v1150_v3 = vunpack.c.h.bf16 %v1096_v18  ;;  %v1850_v61 = vpop.eup %1849  ;;  %1342 = vmatpush1.bf16.msra.mxu0 %v1098_v17 }
 0x31c   : > { %1867 = vpow2.f32 %v1066_v40  ;;  %v1193_v35 = vadd.f32 %v1192_v31, %v1148_v26  ;;  %v1101_v58 = vpack.c.bf16 %v1846_v11, %v1842_v55  ;;  %v1100_v8 = vpack.c.bf16 %v1844_v16, %v1840_v52 }
 0x31d   : > { %1869 = vpow2.f32 %v1068_v0  ;;  %v1231_v48 = vadd.f32 %v1230_v59, %v1151_v30  ;;  %v1153_v32 = vunpack.c.l.bf16 %v1099_v24  ;;  %v1852_v23 = vpop.eup %1851  ;;  %v1152_v49 = vunpack.c.l.bf16 %v1098_v17 }
 0x31e   : > { %1871 = vpow2.f32 %v1070_v2  ;;  %v1194_v12 = vadd.f32 %v1193_v35, %v1150_v3  ;;  %v1854_v38 = vpop.eup %1853  ;;  %v1155_v37 = vunpack.c.h.bf16 %v1099_v24  ;;  %v1154_v51 = vunpack.c.h.bf16 %v1098_v17  ;;  %1343 = vmatprep.subr.bf16.mxu0 %v1101_v58 }
 0x31f   : > { %1873 = vpow2.f32 %v1072_v47  ;;  %v1232_v34 = vadd.f32 %v1231_v48, %v1153_v32  ;;  %v1856_v50 = vpop.eup %1855  ;;  %v1103_v1 = vpack.c.bf16 %v1854_v38, %v1850_v61  ;;  %v1102_v9 = vpack.c.bf16 %v1852_v23, %v1848_v21  ;;  %1344 = vmatpush1.bf16.msra.mxu0 %v1100_v8 }
 0x320   : > { %1875 = vpow2.f32 %v1074_v33  ;;  %v1195_v15 = vadd.f32 %v1194_v12, %v1152_v49  ;;  %v1858_v40 = vpop.eup %1857  ;;  %v1157_v43 = vunpack.c.l.bf16 %v1101_v58  ;;  %v1156_v5 = vunpack.c.l.bf16 %v1100_v8  ;;  %v1743_v12 = vld [vmem:[%s2606_s18] ss:$8 sps:$4 sm:$0xff]  }
 0x321   : > { %v1233_v13 = vadd.f32 %v1232_v34, %v1155_v37  ;;  %v1860_v14 = vpop.eup %1859  ;;  %v1159_v54 = vunpack.c.h.bf16 %v1101_v58  ;;  %v1158_v19 = vunpack.c.h.bf16 %v1100_v8  ;;  %v1161_v53 = vunpack.c.l.bf16 %v1103_v1  ;;  %1345 = vmatprep.subr.bf16.mxu0 %v1103_v1  ;;  %v1746_v37 = vld [vmem:[%s2606_s18 + $0x14] ss:$8 sps:$4 sm:$0xff]  }
 0x322   : > { %v1196_v7 = vadd.f32 %v1195_v15, %v1154_v51  ;;  %v1862_v46 = vpop.eup %1861  ;;  %v1104_v22 = vpack.c.bf16 %v1860_v14, %v1856_v50  ;;  %v1160_v2 = vunpack.c.l.bf16 %v1102_v9  ;;  %v1163_v20 = vunpack.c.h.bf16 %v1103_v1  ;;  %v3332_v50 = vld [vmem:[#allocation46_spill] sm:$0xff]  ;;  %v3333_v15 = vld [vmem:[#allocation49_spill] sm:$0xff] }
 0x323   : > { %v1234_v10 = vadd.f32 %v1233_v13, %v1157_v43  ;;  %v1864_v18 = vpop.eup %1863  ;;  %v1105_v45 = vpack.c.bf16 %v1862_v46, %v1858_v40  ;;  %v1162_v27 = vunpack.c.h.bf16 %v1102_v9  ;;  %1346 = vmatpush1.bf16.msra.mxu0 %v1102_v9  ;;  %v3334_v1 = vsub.f32 %v3332_v50, %v3333_v15  ;;  %v1431_v15 = vld [vmem:[%s2313_s17 + $0x28] sm:$0xff] }
 0x324   : > { %v1197_v25 = vadd.f32 %v1196_v7, %v1156_v5  ;;  %v1866_v0 = vpop.eup %1865  ;;  %v1164_v6 = vunpack.c.l.bf16 %v1104_v22  ;;  %v1166_v33 = vunpack.c.h.bf16 %v1104_v22  ;;  %v1748_v5 = vld [vmem:[%s2606_s18 + $0x10] ss:$8 sps:$4 sm:$0xff]  }
 0x325   : > { %v1235_v56 = vadd.f32 %v1234_v10, %v1159_v54  ;;  %v1165_v55 = vunpack.c.l.bf16 %v1105_v45  ;;  %1347 = vmatprep.subr.bf16.mxu0 %v1105_v45  ;;  %v1167_v16 = vunpack.c.h.bf16 %v1105_v45  ;;  %v873_v9 = vmul.f32 1.442695, %v3334_v1 }
 0x326   : > { %v1868_v29 = vpop.eup %1867  ;;  %v1198_v44 = vadd.f32 %v1197_v25, %v1158_v19 }
 0x327   : > { %v1870_v36 = vpop.eup %1869  ;;  %v1236_v42 = vadd.f32 %v1235_v56, %v1161_v53  ;;  %v1106_v60 = vpack.c.bf16 %v1868_v29, %v1864_v18  ;;  %1348 = vmatpush1.bf16.msra.mxu0 %v1104_v22  ;;  %1877 = vpow2.f32 %v873_v9  ;;  %v1110_v56 = vld [vmem:[#allocation4] sm:$0x3]  ;;  %v3335_v53 = vld [vmem:[#allocation45_spill] sm:$0xff] }
 0x328   : > { %v1872_v4 = vpop.eup %1871  ;;  %v1199_v52 = vadd.f32 %v1198_v44, %v1160_v2  ;;  %v1107_v57 = vpack.c.bf16 %v1870_v36, %v1866_v0 }
 0x329   : > { %v1874_v24 = vpop.eup %1873  ;;  %v1237_v17 = vadd.f32 %v1236_v42, %v1163_v20  ;;  %v1168_v59 = vunpack.c.l.bf16 %v1106_v60  ;;  %v1170_v35 = vunpack.c.h.bf16 %v1106_v60 }
 0x32a   : > { %v1876_v39 = vpop.eup %1875  ;;  %v1200_v47 = vadd.f32 %v1199_v52, %v1162_v27  ;;  %v1109_v63 = vpack.c.bf16 %v2775_v41, %v1874_v24  ;;  %v1169_v11 = vunpack.c.l.bf16 %v1107_v57  ;;  %1349 = vmatprep.subr.bf16.mxu0 %v1107_v57  ;;  %v1171_v3 = vunpack.c.h.bf16 %v1107_v57  ;;  %v3337_v27 = vld [vmem:[#allocation47_spill] sm:$0xff]  ;;  %v3338_v57 = vld [vmem:[#allocation48_spill] sm:$0xff] }
 0x32b   : > { %v1238_v62 = vadd.f32 %v1237_v17, %v1165_v55  ;;  %v1108_v28 = vpack.c.bf16 %v1876_v39, %v1872_v4  ;;  %1350 = vmatpush1.bf16.msra.mxu0 %v1106_v60  ;;  %v1397_v4 = vstv %s1394_s20 }
 0x32c   : > { %v1201_v31 = vadd.f32 %v1200_v47, %v1164_v6  ;;  %v1173_v41 = vunpack.c.l.bf16 %v1109_v63  ;;  %1351 = vmatprep.subr.bf16.mxu0 %v1109_v63  ;;  %v1175_v32 = vunpack.c.h.bf16 %v1109_v63 }
 0x32d   : > { %v1239_v26 = vadd.f32 %v1238_v62, %v1167_v16  ;;  %v1172_v48 = vunpack.c.l.bf16 %v1108_v28  ;;  %v1174_v49 = vunpack.c.h.bf16 %v1108_v28  ;;  %v1426_v62 = vld [vmem:[%s2313_s17] sm:$0xff] }
 0x32e   : > { %v1202_v30 = vadd.f32 %v1201_v31, %v1166_v33 }
 0x32f   : > { %v1240_v21 = vadd.f32 %v1239_v26, %v1169_v11  ;;  %1352 = vmatpush1.bf16.msra.mxu0 %v1108_v28  ;;  %v1427_v11 = vld [vmem:[%s2313_s17 + $0x8] sm:$0xff] }
 0x330   : > { %v1203_v58 = vadd.f32 %v1202_v30, %v1168_v59 }
 0x331   : > { %v1241_v8 = vadd.f32 %v1240_v21, %v1171_v3  ;;  %v1878_v0 = vpop.eup %1877  ;;  %v1428_v21 = vld [vmem:[%s2313_s17 + $0x10] sm:$0xff] }
 0x332   : > { %v1204_v61 = vadd.f32 %v1203_v58, %v1170_v35  ;;  %1354 = vmatmul.mubr.bf16.vlgmr.msra.gmra.mrb[4].mxu0 %v1743_v12  ;;  %v1111_v44 = vmul.f32 %v1878_v0, %v1110_v56  ;;  %v1286_v52 = vrot.slane %v1878_v0, %v3337_v27  ;;  %v1290_v24 = vrot.slane %v1878_v0, %v3338_v57 }
 0x333   : > { %v1242_v23 = vadd.f32 %v1241_v8, %v1173_v41  ;;  %1363 = vmatprep.mubr.bf16.mxu0 %v1746_v37  ;;  %v1429_v41 = vld [vmem:[%s2313_s17 + $0x18] sm:$0xff]  ;;  %v1430_v37 = vld [vmem:[%s2313_s17 + $0x20] sm:$0xff] }
 0x334   : > { %v1205_v38 = vadd.f32 %v1204_v61, %v1172_v48  ;;  %v1293_v55 = vmul.f32 0.0, %v1286_v52  ;;  %v1294_v47 = vmul.f32 0.0, %v1290_v24 }
 0x335   : > { %v1243_v34 = vadd.f32 %v1242_v23, %v1175_v32 }
 0x336   : > { %v1206_v51 = vadd.f32 %v1205_v38, %v1174_v49 }
 0x337   : > { %v1244_v40 = vrot.slane %v1243_v34, 4 }
 0x338   : > { %v1207_v13 = vrot.slane %v1206_v51, 4 }
 0x339   : > { %v1245_v43 = vadd.f32 %v1244_v40, %v1243_v34 }
 0x33a   : > { %v1208_v14 = vadd.f32 %v1207_v13, %v1206_v51  ;;  %1364 = vmatmul.mubr.bf16.gmra.mrb[8].mxu0 %v1748_v5  ;;  %v1432_v13 = vld [vmem:[%s2313_s17 + $0x30] sm:$0xff]  ;;  %v1433_v5 = vld [vmem:[%s2313_s17 + $0x38] sm:$0xff]  ;;  %s1971_s17 = scalar_lea.vmem %s3059_s16, 1024 }
 0x33b   : > { %v1246_v7 = vrot.slane %v1245_v43, 2  ;;  %p1972_p0 = scmp.ne.s32.totalorder %s3059_s16, %s1971_s17  ;;  %p1979_p4 = scmp.lt.s32.totalorder %s1977_s30, %s1971_s17 }
 0x33c   : > { %v1209_v46 = vrot.slane %v1208_v14, 2 }
 0x33d   : > { %v1247_v54 = vadd.f32 %v1246_v7, %v1245_v43  ;;  %p1973_p8 = pnand %p1972_p0, %p3339_p6  ;;  %p1980_p10 = por %p1979_p4, %p1978_p12 }
 0x33e   : > { %v1210_v10 = vadd.f32 %v1209_v46, %v1208_v14 }
 0x33f   : > { %v1248_v22 = vrot.slane %v1247_v54, 1  ;;  %p1974_p9 = pneg %p1973_p8 }
 0x340   : > { %v1211_v18 = vrot.slane %v1210_v10, 1 }
 0x341   : > { %v1249_v19 = vadd.f32 %v1248_v22, %v1247_v54  ;;  %p1981_p13 = pnand %p1980_p10, %p1974_p9 }
 0x342   : > { %v1212_v25 = vadd.f32 %v1211_v18, %v1210_v10 }
 0x344   : > { %v1252_v45 = vcombine.low %v1212_v25, %v1249_v19 }
 0x346   : > { %v1259_v29 = vrot.slane %v1252_v45, %v3335_v53 }
 0x348   : > { %v1266_v2 = vrot.slane %v1259_v29, %v3335_v53 }
 0x34a   : > { %v1268_v36 = vadd.f32 %v1266_v2, %v1111_v44 }
 0x34c   : > { %1273 = vst.msk [vmem:[#allocation4] sm:$0x3] %vm2395_vm2, %v1268_v36 }
 0x353   : > { %v1395_v42 = vld [vmem:[#allocation4] sm:$0x3] }
 0x354   : > { %1879 = vrcp.f32 %v1395_v42 }
 0x35e   : > { %v1880_v60 = vpop.eup %1879 }
 0x35f   : > { %v1398_v17 = vmul.f32 %v1880_v60, %v1397_v4 }
 0x361   : > { %v1411_v63 = vrot.slane %v1398_v17, %v3337_v27  ;;  %v1415_v33 = vrot.slane %v1398_v17, %v3338_v57 }
 0x405   : > { %v1355_v39 = vpop.f32.mrb[4].mxu0 }
 0x406   : > { %v1374_v6 = vadd.f32 %v1355_v39, %v1293_v55  ;;  %v1357_v16 = vpop.f32.mrb[5].mxu0 }
 0x407   : > { %v1375_v28 = vadd.f32 %v1357_v16, %v1294_v47  ;;  %v1359_v31 = vpop.f32.mrb[6].mxu0 }
 0x408   : > { %v1418_v26 = vmul.f32 %v1411_v63, %v1374_v6  ;;  %v1376_v30 = vadd.f32 %v1359_v31, %v1293_v55  ;;  %v1361_v59 = vpop.f32.mrb[7].mxu0 }
 0x409   : > { %v1419_v3 = vmul.f32 %v1415_v33, %v1375_v28  ;;  %v1377_v35 = vadd.f32 %v1361_v59, %v1294_v47 }
 0x40a   : > { %v1434_v58 = vadd.f32 %v1426_v62, %v1418_v26  ;;  %v1420_v8 = vmul.f32 %v1411_v63, %v1376_v30 }
 0x40b   : > { %v1435_v61 = vadd.f32 %v1427_v11, %v1419_v3  ;;  %v1421_v48 = vmul.f32 %v1415_v33, %v1377_v35 }
 0x40c   : > { %1442 = vst [vmem:[%s3041_s8] sm:$0xff] %v1434_v58  ;;  %v1436_v32 = vadd.f32 %v1428_v21, %v1420_v8 }
 0x40d   : > { %1443 = vst [vmem:[%s3041_s8 + $0x8] sm:$0xff] %v1435_v61  ;;  %v1437_v23 = vadd.f32 %v1429_v41, %v1421_v48  ;;  %v1365_v12 = vpop.f32.mrb[8].mxu0 }
 0x40e   : > { %1444 = vst [vmem:[%s3041_s8 + $0x10] sm:$0xff] %v1436_v32  ;;  %v1378_v49 = vadd.f32 %v1365_v12, %v1293_v55  ;;  %v1367_v38 = vpop.f32.mrb[9].mxu0 }
 0x40f   : > { %1445 = vst [vmem:[%s3041_s8 + $0x18] sm:$0xff] %v1437_v23  ;;  %v1379_v34 = vadd.f32 %v1367_v38, %v1294_v47  ;;  %v1369_v51 = vpop.f32.mrb[10].mxu0 }
 0x410   : > { %v1422_v50 = vmul.f32 %v1411_v63, %v1378_v49  ;;  %v1380_v1 = vadd.f32 %v1369_v51, %v1293_v55  ;;  %v1371_v9 = vpop.f32.mrb[11].mxu0 }
 0x411   : > { %v1423_v40 = vmul.f32 %v1415_v33, %v1379_v34  ;;  %v1381_v43 = vadd.f32 %v1371_v9, %v1294_v47 }
 0x412   : > { %v1438_v14 = vadd.f32 %v1430_v37, %v1422_v50  ;;  %v1424_v7 = vmul.f32 %v1411_v63, %v1380_v1 }
 0x413   : > { %v1439_v46 = vadd.f32 %v1431_v15, %v1423_v40  ;;  %v1425_v54 = vmul.f32 %v1415_v33, %v1381_v43 }
 0x414   : > { %1446 = vst [vmem:[%s3041_s8 + $0x20] sm:$0xff] %v1438_v14  ;;  %v1440_v10 = vadd.f32 %v1432_v13, %v1424_v7 }
 0x415   : > { %1447 = vst [vmem:[%s3041_s8 + $0x28] sm:$0xff] %v1439_v46  ;;  %v1441_v22 = vadd.f32 %v1433_v5, %v1425_v54 }
 0x416   : > { %1448 = vst [vmem:[%s3041_s8 + $0x30] sm:$0xff] %v1440_v10 }
 0x417   : > { %1449 = vst [vmem:[%s3041_s8 + $0x38] sm:$0xff] %v1441_v22 }
 0x418   : > { %1984 = shalt.err (!%p1981_p13)
}
 0x419   : > { %s1985_s5 = scalar_lea.hbm %s3057_s0, 1024  ;;  %s1989_s14 = scalar_lea.hbm %s3117_s6, 2048 }
 0x41a   : > { %p1986_p11 = scmp.ne.s32.totalorder %s3057_s0, %s1985_s5  ;;  %p1990_p5 = scmp.lt.u32.totalorder %s3057_s0, %s3117_s6 }
 0x41b   : > { %p1991_p2 = scmp.lt.u32.totalorder %s1989_s14, %s1985_s5  ;;  %p1993_p0 = scmp.lt.u32.totalorder %s1985_s5, %s3057_s0 }
 0x41c   : > { %p1987_p7 = pnand %p1986_p11, %p3339_p6 }
 0x41d   : > { %p1992_p1 = por %p1991_p2, %p1990_p5 }
 0x41e   : > { %p1988_p3 = pneg %p1987_p7 }
 0x41f   : > { %p1994_p8 = por %p1993_p0, %p1992_p1 }
 0x421   : > { %p1995_p9 = pnand %p1994_p8, %p1988_p3 }
 0x423   : > { %1998 = shalt.err (!%p1995_p9)
}
 0x424   : > { %s2071_s19 = smov 256   ;;  %s2072_s18 = smov 16  }
 0x425   : > { %1662 = dma.vmem_to_hbm [thread:$0]  (%p3339_p6), %s3059_s16, 1024, %s3057_s0, %s1451_s26, %s2071_s19, %s2071_s19, %s2072_s18  }
 0x426 PF: > { %s1481_s20 = sand.u32 1, %s2037_s23   ;;  %p3340_p12 = scmp.ne.s32.totalorder %s3190_s13, 0 }
 0x427   : > { %p3341_p4 = scmp.ge.s32.totalorder %s2057_s28, 2  ;;  %s1482_s8 = scalar_lea.sflag [#allocation9], %s1481_s20 }
 0x429   : > { %p1675_p10 = pnand %p3341_p4, %p3340_p12 }
 0x42b   : > { %2032 = dma.done.wait (!%p1675_p10), %s1482_s8, 1024  }
 0x42c   : > { %2034 = vsyncadd (!%p1675_p10), %s1482_s8, 4294966272  ;;  %s26_s28 = sadd.s32 1, %s2057_s28   ;;  %s3342_s25 = sld [smem:[#allocation17_spill]] }
 0x42d   : > { %p23_p13 = scmp.ge.s32.totalorder %s26_s28, 4   ;;  %s3343_s15 = sld [smem:[#allocation19_spill]] }
 0x42e   : > { %s3344_s11 = sld [smem:[#allocation18_spill]]  ;;  %s3345_s23 = smov %s2041_s24 }
 0x42f   : > { %s3348_s26 = smov %s2053_s27  ;;  %25 = sbr.rel (!%p23_p13) target bundleno = 12 (0xc), region = 121 }
 0x432   : > { %s3346_s24 = smov %s3342_s25 }
 0x433   : > { %s3347_s25 = smov %s3343_s15 }
 0x434   : > { %s3349_s27 = smov %s3344_s11 }
 0x436   :  { %1487 = vsyncpa [#allocation8], 1 }
 0x437   :  { %1489 = vsyncpa [#allocation8 + $0x1], 1 }
 0x438   :  { %1490 = vsyncpa [#allocation11], 1 }
 0x439   :  { %1492 = vsyncpa [#allocation11 + $0x1], 1 }
 0x43a   :  { %1493 = vsyncpa [#allocation9], 1 }
 0x43b   :  { %1495 = vsyncpa [#allocation9 + $0x1], 1 }

</bundles_post_ra>
